<compile_context>
chip_gen: v6e
topology: v6e:2x2x1
jax: 0.10.0
libtpu: 0.0.40
codegen_flags: <defaults>
</compile_context>

<pallas_src>
import math

import jax
import jax.numpy as jnp
import numpy as np
from jax import lax
from jax.experimental import pallas as pl
from jax.experimental.pallas import tpu as pltpu


# ---------------------------------------------------------------------------
# Fused kernel: conv1 -> pool8 -> (conv2,3,4) -> pool4 -> conv_c5, one batch
# element per grid step, channels-last inside the kernel.
# ---------------------------------------------------------------------------
def _make_fused_kernel(L1, Cc, Kc, fp_dim):
    assert L1 % 8 == 0
    L2 = L1 // 8
    assert L2 % 4 == 0
    L5 = L2 // 4
    pad_l = (Kc - 1) // 2          # TF-'SAME' left pad for the stride-1 convs (=3)
    base = 8                       # activation lives at scratch rows [base, base+L2)

    def _pool_max(h, window, n_out):
        # SAME max-pool (window divides the row count here):
        #   out[t] = max_j h[window*t + j]
        # computed as a max over `window` exact one-hot row-selection matmuls so
        # only well-supported MXU/VPU ops are used (no reshape / strided access).
        n = h.shape[0]
        rows = lax.broadcasted_iota(jnp.int32, (n_out, n), 0)
        cols = lax.broadcasted_iota(jnp.int32, (n_out, n), 1)
        out = None
        for j in range(window):
            sel = (cols == rows * window + j).astype(jnp.float32)
            picked = jnp.dot(sel, h, preferred_element_type=jnp.float32)
            out = picked if out is None else jnp.maximum(out, picked)
        return out

    def kernel(xr_ref, w1_ref, sh1_ref, w234_ref, sh234_ref, wc5_ref, bc5_ref,
               o_ref, hp_ref):
        # ---- conv1 (k=2*s, stride=s, SAME, no bias) + folded BN + ReLU -------
        # patch row l = [xr[l] | xr[l+1]]  =>  two half-kernel matmuls.
        x0 = xr_ref[0:L1, :].astype(jnp.bfloat16)           # (L1, 25)
        x1 = xr_ref[1:L1 + 1, :].astype(jnp.bfloat16)       # (L1, 25)
        h = jnp.dot(x0, w1_ref[0], preferred_element_type=jnp.float32)
        h = h + jnp.dot(x1, w1_ref[1], preferred_element_type=jnp.float32)
        h = jnp.maximum(h + sh1_ref[...], 0.0)               # (L1, Cc) f32

        # ---- MaxPool1d(8, SAME) (Dropout = identity in eval) -----------------
        h = _pool_max(h, 8, L2)                               # (L2, Cc)

        # ---- conv2..conv4 (k=Kc, stride=1, SAME, no bias) + BN + ReLU --------
        zero_tile = jnp.zeros((8, Cc), jnp.float32)
        hp_ref[0:base, :] = zero_tile                         # left zero-pad rows
        hp_ref[base + L2:base + L2 + 8, :] = zero_tile        # right zero-pad rows
        for i in range(3):
            hp_ref[base:base + L2, :] = h                     # aligned store
            # tap-stacked im2col: columns [k*Cc:(k+1)*Cc] = padded rows l+k
            patches = jnp.concatenate(
                [hp_ref[base - pad_l + k:base - pad_l + k + L2, :]
                 for k in range(Kc)], axis=1)                 # (L2, Kc*Cc)
            acc = jnp.dot(patches.astype(jnp.bfloat16), w234_ref[i],
                          preferred_element_type=jnp.float32)
            h = jnp.maximum(acc + sh234_ref[i], 0.0)          # (L2, Cc)

        # ---- MaxPool1d(4, SAME) ----------------------------------------------
        h = _pool_max(h, 4, L5)                               # (L5, Cc)

        # ---- conv_c5: 1x1 conv with bias ('scratch' mode head) ---------------
        p5 = jnp.dot(h.astype(jnp.bfloat16), wc5_ref[...],
                     preferred_element_type=jnp.float32) + bc5_ref[...]
        o_ref[...] = p5                                       # (L5, fp_dim)

    return kernel


# ---------------------------------------------------------------------------
# Parameters (deterministic, mirrors __init__ + _initialize_weights, eval BN).
# ---------------------------------------------------------------------------
def init_params(key, fp_dim=128, chn2=128):
    ks = jax.random.split(key, 5)

    def kaiming(k, shape):  # kaiming_normal_, mode='fan_out', nonlinearity='relu'
        fan_out = shape[0] * shape[2]  # out_channels * kernel_size (torch OIK)
        std = math.sqrt(2.0 / fan_out)
        return std * jax.random.normal(k, shape, jnp.float32)

    p = {
        "w1": kaiming(ks[0], (chn2, 1, 50)),
        "w2": kaiming(ks[1], (chn2, chn2, 8)),
        "w3": kaiming(ks[2], (chn2, chn2, 8)),
        "w4": kaiming(ks[3], (chn2, chn2, 8)),
        "wc5": kaiming(ks[4], (fp_dim, chn2, 1)),
        "bc5": jnp.zeros((fp_dim,), jnp.float32),
    }
    for i in (1, 2, 3, 4):  # BatchNorm1d: weight=1, bias=0, running stats 0/1 (eval)
        p[f"bn{i}_gamma"] = jnp.ones((chn2,), jnp.float32)
        p[f"bn{i}_beta"] = jnp.zeros((chn2,), jnp.float32)
        p[f"bn{i}_mean"] = jnp.zeros((chn2,), jnp.float32)
        p[f"bn{i}_var"] = jnp.ones((chn2,), jnp.float32)
    return p


def bn_fold(gamma, beta, mean, var, eps=1e-5):
    s = gamma / jnp.sqrt(var + eps)
    return s.reshape(1, -1), (beta - mean * s).reshape(1, -1)


# ---------------------------------------------------------------------------
# Forward pass (training_mode='scratch' -> conv_c5 branch; Dropout = identity).
# ---------------------------------------------------------------------------
def tinysleepnet_feature_forward(x_ncl, params):
    """x_ncl: (N, 1, L) float32 -> p5: (N, fp_dim, L_out)  (NCL, like PyTorch)."""
    N, cin, L = x_ncl.shape
    assert cin == 1
    k1, s1 = 50, 25
    L1 = -(-L // s1)
    pad = (L1 - 1) * s1 + k1 - L
    assert pad >= 0 and k1 == 2 * s1
    pad_l, pad_r = pad // 2, pad - pad // 2
    # TODO(synk): general SAME pooling (L1 % 8 != 0 or (L1//8) % 4 != 0) would need
    # -inf padding in the pooling epilogue; not needed for the shapes used here.
    assert L1 % 8 == 0 and (L1 // 8) % 4 == 0
    L2, L5 = L1 // 8, L1 // 32

    Cc = params["w1"].shape[0]
    Kc = params["w2"].shape[2]
    fp_dim = params["wc5"].shape[0]

    # Padded input viewed as (N, L1+1, s1): row r holds x_pad[r*s1 : (r+1)*s1].
    x_pad = jnp.pad(x_ncl[:, 0, :], ((0, 0), (pad_l, pad_r)))
    xr = x_pad.reshape(N, L1 + 1, s1)

    # conv1 weight: (Cout,1,50) -> (50,Cout), fold BN1 scale, split into 2 halves.
    sc1, sh1 = bn_fold(params["bn1_gamma"], params["bn1_beta"],
                       params["bn1_mean"], params["bn1_var"])
    w1 = params["w1"][:, 0, :].T * sc1                                # (k1, Cc)
    w1s = jnp.stack([w1[:s1], w1[s1:]], axis=0).astype(jnp.bfloat16)  # (2, s1, Cc)

    # conv2..4 weights: (Cout,Cin,K) -> (K*Cin, Cout), fold BN scale, stack layers.
    w_list, sh_list = [], []
    for i in (2, 3, 4):
        sc, sh = bn_fold(params[f"bn{i}_gamma"], params[f"bn{i}_beta"],
                         params[f"bn{i}_mean"], params[f"bn{i}_var"])
        wk = jnp.transpose(params[f"w{i}"], (2, 1, 0)).reshape(Kc * Cc, Cc) * sc
        w_list.append(wk)
        sh_list.append(sh)
    w234 = jnp.stack(w_list, axis=0).astype(jnp.bfloat16)             # (3, Kc*Cc, Cc)
    sh234 = jnp.stack(sh_list, axis=0)                                # (3, 1, Cc)

    wc5 = params["wc5"][:, :, 0].T.astype(jnp.bfloat16)               # (Cc, fp_dim)
    bc5 = params["bc5"].reshape(1, -1)                                # (1, fp_dim)

    out = pl.pallas_call(
        _make_fused_kernel(L1, Cc, Kc, fp_dim),
        out_shape=jax.ShapeDtypeStruct((N, L5, fp_dim), jnp.float32),
        grid=(N,),
        in_specs=[
            pl.BlockSpec((None, L1 + 1, s1), lambda n: (n, 0, 0)),
            pl.BlockSpec((2, s1, Cc), lambda n: (0, 0, 0)),
            pl.BlockSpec((1, Cc), lambda n: (0, 0)),
            pl.BlockSpec((3, Kc * Cc, Cc), lambda n: (0, 0, 0)),
            pl.BlockSpec((3, 1, Cc), lambda n: (0, 0, 0)),
            pl.BlockSpec((Cc, fp_dim), lambda n: (0, 0)),
            pl.BlockSpec((1, fp_dim), lambda n: (0, 0)),
        ],
        out_specs=pl.BlockSpec((None, L5, fp_dim), lambda n: (n, 0, 0)),
        scratch_shapes=[pltpu.VMEM((L2 + 16, Cc), jnp.float32)],
        compiler_params=pltpu.CompilerParams(
            dimension_semantics=("parallel",),
            vmem_limit_bytes=32 << 20,
        ),
    )(xr, w1s, sh1, w234, sh234, wc5, bc5)

    return jnp.transpose(out, (0, 2, 1))                              # NCL


# ---------------------------------------------------------------------------
# Pure-JAX reference (independent code path) for a correctness sanity check.
# ---------------------------------------------------------------------------
def reference_forward(x_ncl, params):
    def conv(x, w, stride, pad):
        return lax.conv_general_dilated(x, w, (stride,), [pad],
                                        dimension_numbers=("NCH", "OIH", "NCH"),
                                        precision=lax.Precision.HIGHEST)

    def bn(x, g, b, m, v, eps=1e-5):
        s = g / jnp.sqrt(v + eps)
        return x * s[None, :, None] + (b - m * s)[None, :, None]

    def pool(x, w):
        n_, c_, l_ = x.shape
        return x.reshape(n_, c_, l_ // w, w).max(axis=-1)

    N, _, L = x_ncl.shape
    L1 = -(-L // 25)
    pad = max((L1 - 1) * 25 + 50 - L, 0)
    h = jax.nn.relu(bn(conv(x_ncl, params["w1"], 25, (pad // 2, pad - pad // 2)),
                       params["bn1_gamma"], params["bn1_beta"],
                       params["bn1_mean"], params["bn1_var"]))
    h = pool(h, 8)
    for i in (2, 3, 4):
        h = jax.nn.relu(bn(conv(h, params[f"w{i}"], 1, (3, 4)),
                           params[f"bn{i}_gamma"], params[f"bn{i}_beta"],
                           params[f"bn{i}_mean"], params[f"bn{i}_var"]))
    h = pool(h, 4)
    return conv(h, params["wc5"], 1, (0, 0)) + params["bc5"][None, :, None]


if __name__ == "__main__":
    key = jax.random.PRNGKey(0)
    kx, kp = jax.random.split(key)
    N, L = 2, 3200                      # (batch, 1-channel EEG, 3200 samples)
    x = jax.random.normal(kx, (N, 1, L), jnp.float32)
    params = init_params(kp, fp_dim=128)

    out = jax.jit(tinysleepnet_feature_forward)(x, params)
    out = jax.block_until_ready(out)

    ref = reference_forward(x, params)
    # Kernel feeds the MXU bf16 operands (f32 accumulation); reference is f32 at
    # HIGHEST precision, so tolerances are loosened accordingly.
    np.testing.assert_allclose(np.asarray(out), np.asarray(ref), rtol=5e-2, atol=5e-2)
    assert out.shape == (N, 128, 4), out.shape

    print("KERNEL_OK")
</pallas_src>

<mosaic_0001>
module attributes {stable_mosaic.version = 11 : i64} {
  func.func @kernel(%arg0: i32, %arg1: memref<1x129x25xf32, #tpu.memory_space<vmem>>, %arg2: memref<2x25x128xbf16, #tpu.memory_space<vmem>>, %arg3: memref<1x128xf32, #tpu.memory_space<vmem>>, %arg4: memref<3x1024x128xbf16, #tpu.memory_space<vmem>>, %arg5: memref<3x1x128xf32, #tpu.memory_space<vmem>>, %arg6: memref<128x128xbf16, #tpu.memory_space<vmem>>, %arg7: memref<1x128xf32, #tpu.memory_space<vmem>>, %arg8: memref<1x4x128xf32, #tpu.memory_space<vmem>>, %arg9: memref<32x128xf32, #tpu.memory_space<vmem>>) attributes {dimension_semantics = [#tpu.dimension_semantics<parallel>], iteration_bounds = array<i64: 2>, scalar_prefetch = 0 : i64, scratch_operands = 1 : i64, tpu.core_type = #tpu.core_type<tc>, window_params = [{transform_indices = @transform_0, window_bounds = array<i64: 1, 129, 25>}, {pipeline_mode = #tpu.pipeline_mode<synchronous>, transform_indices = @transform_1, window_bounds = array<i64: 2, 25, 128>}, {pipeline_mode = #tpu.pipeline_mode<synchronous>, transform_indices = @transform_2, window_bounds = array<i64: 1, 128>}, {pipeline_mode = #tpu.pipeline_mode<synchronous>, transform_indices = @transform_3, window_bounds = array<i64: 3, 1024, 128>}, {pipeline_mode = #tpu.pipeline_mode<synchronous>, transform_indices = @transform_4, window_bounds = array<i64: 3, 1, 128>}, {pipeline_mode = #tpu.pipeline_mode<synchronous>, transform_indices = @transform_5, window_bounds = array<i64: 128, 128>}, {pipeline_mode = #tpu.pipeline_mode<synchronous>, transform_indices = @transform_6, window_bounds = array<i64: 1, 128>}, {transform_indices = @transform_7, window_bounds = array<i64: 1, 4, 128>}]} {
    %c0 = arith.constant 0 : index
    %c0_0 = arith.constant 0 : index
    %c0_1 = arith.constant 0 : index
    %0 = vector.load %arg1[%c0, %c0_0, %c0_1] : memref<1x129x25xf32, #tpu.memory_space<vmem>>, vector<1x128x25xf32>
    %1 = vector.shape_cast %0 : vector<1x128x25xf32> to vector<128x25xf32>
    %2 = arith.truncf %1 : vector<128x25xf32> to vector<128x25xbf16>
    %c0_2 = arith.constant 0 : index
    %c1 = arith.constant 1 : index
    %c0_3 = arith.constant 0 : index
    %3 = vector.load %arg1[%c0_2, %c1, %c0_3] : memref<1x129x25xf32, #tpu.memory_space<vmem>>, vector<1x128x25xf32>
    %4 = vector.shape_cast %3 : vector<1x128x25xf32> to vector<128x25xf32>
    %5 = arith.truncf %4 : vector<128x25xf32> to vector<128x25xbf16>
    %c0_4 = arith.constant 0 : index
    %c0_5 = arith.constant 0 : index
    %c0_6 = arith.constant 0 : index
    %6 = vector.load %arg2[%c0_4, %c0_5, %c0_6] : memref<2x25x128xbf16, #tpu.memory_space<vmem>>, vector<1x25x128xbf16>
    %7 = vector.shape_cast %6 : vector<1x25x128xbf16> to vector<25x128xbf16>
    %cst = arith.constant dense<0.000000e+00> : vector<128x128xf32>
    %8 = tpu.matmul %2, %7, %cst {dimension_numbers = #tpu.dot_dimension_numbers<[1], [0], [0], [1], [0, 0, 1, 1], [], []>} : vector<128x25xbf16>, vector<25x128xbf16>, vector<128x128xf32> -> vector<128x128xf32>
    %c1_7 = arith.constant 1 : index
    %c0_8 = arith.constant 0 : index
    %c0_9 = arith.constant 0 : index
    %9 = vector.load %arg2[%c1_7, %c0_8, %c0_9] : memref<2x25x128xbf16, #tpu.memory_space<vmem>>, vector<1x25x128xbf16>
    %10 = vector.shape_cast %9 : vector<1x25x128xbf16> to vector<25x128xbf16>
    %cst_10 = arith.constant dense<0.000000e+00> : vector<128x128xf32>
    %11 = tpu.matmul %5, %10, %cst_10 {dimension_numbers = #tpu.dot_dimension_numbers<[1], [0], [0], [1], [0, 0, 1, 1], [], []>} : vector<128x25xbf16>, vector<25x128xbf16>, vector<128x128xf32> -> vector<128x128xf32>
    %12 = arith.addf %8, %11 : vector<128x128xf32>
    %c0_11 = arith.constant 0 : index
    %c0_12 = arith.constant 0 : index
    %13 = vector.load %arg3[%c0_11, %c0_12] : memref<1x128xf32, #tpu.memory_space<vmem>>, vector<1x128xf32>
    %14 = vector.broadcast %13 : vector<1x128xf32> to vector<128x128xf32>
    %15 = arith.addf %12, %14 : vector<128x128xf32>
    %cst_13 = arith.constant 0.000000e+00 : f32
    %16 = vector.broadcast %cst_13 : f32 to vector<128x128xf32>
    %17 = arith.maximumf %15, %16 : vector<128x128xf32>
    %18 = tpu.iota {dimensions = array<i32: 0>} : vector<16x128xi32>
    %19 = tpu.iota {dimensions = array<i32: 1>} : vector<16x128xi32>
    %c8_i32 = arith.constant 8 : i32
    %20 = vector.broadcast %c8_i32 : i32 to vector<16x128xi32>
    %21 = arith.muli %18, %20 : vector<16x128xi32>
    %c0_i32 = arith.constant 0 : i32
    %22 = vector.broadcast %c0_i32 : i32 to vector<16x128xi32>
    %23 = arith.addi %21, %22 : vector<16x128xi32>
    %24 = arith.cmpi eq, %19, %23 : vector<16x128xi32>
    %25 = arith.extui %24 : vector<16x128xi1> to vector<16x128xi32>
    %26 = arith.sitofp %25 : vector<16x128xi32> to vector<16x128xf32>
    %cst_14 = arith.constant dense<0.000000e+00> : vector<16x128xf32>
    %27 = tpu.matmul %26, %17, %cst_14 {dimension_numbers = #tpu.dot_dimension_numbers<[1], [0], [0], [1], [0, 0, 1, 1], [], []>} : vector<16x128xf32>, vector<128x128xf32>, vector<16x128xf32> -> vector<16x128xf32>
    %c8_i32_15 = arith.constant 8 : i32
    %28 = vector.broadcast %c8_i32_15 : i32 to vector<16x128xi32>
    %29 = arith.muli %18, %28 : vector<16x128xi32>
    %c1_i32 = arith.constant 1 : i32
    %30 = vector.broadcast %c1_i32 : i32 to vector<16x128xi32>
    %31 = arith.addi %29, %30 : vector<16x128xi32>
    %32 = arith.cmpi eq, %19, %31 : vector<16x128xi32>
    %33 = arith.extui %32 : vector<16x128xi1> to vector<16x128xi32>
    %34 = arith.sitofp %33 : vector<16x128xi32> to vector<16x128xf32>
    %cst_16 = arith.constant dense<0.000000e+00> : vector<16x128xf32>
    %35 = tpu.matmul %34, %17, %cst_16 {dimension_numbers = #tpu.dot_dimension_numbers<[1], [0], [0], [1], [0, 0, 1, 1], [], []>} : vector<16x128xf32>, vector<128x128xf32>, vector<16x128xf32> -> vector<16x128xf32>
    %36 = arith.maximumf %27, %35 : vector<16x128xf32>
    %c8_i32_17 = arith.constant 8 : i32
    %37 = vector.broadcast %c8_i32_17 : i32 to vector<16x128xi32>
    %38 = arith.muli %18, %37 : vector<16x128xi32>
    %c2_i32 = arith.constant 2 : i32
    %39 = vector.broadcast %c2_i32 : i32 to vector<16x128xi32>
    %40 = arith.addi %38, %39 : vector<16x128xi32>
    %41 = arith.cmpi eq, %19, %40 : vector<16x128xi32>
    %42 = arith.extui %41 : vector<16x128xi1> to vector<16x128xi32>
    %43 = arith.sitofp %42 : vector<16x128xi32> to vector<16x128xf32>
    %cst_18 = arith.constant dense<0.000000e+00> : vector<16x128xf32>
    %44 = tpu.matmul %43, %17, %cst_18 {dimension_numbers = #tpu.dot_dimension_numbers<[1], [0], [0], [1], [0, 0, 1, 1], [], []>} : vector<16x128xf32>, vector<128x128xf32>, vector<16x128xf32> -> vector<16x128xf32>
    %45 = arith.maximumf %36, %44 : vector<16x128xf32>
    %c8_i32_19 = arith.constant 8 : i32
    %46 = vector.broadcast %c8_i32_19 : i32 to vector<16x128xi32>
    %47 = arith.muli %18, %46 : vector<16x128xi32>
    %c3_i32 = arith.constant 3 : i32
    %48 = vector.broadcast %c3_i32 : i32 to vector<16x128xi32>
    %49 = arith.addi %47, %48 : vector<16x128xi32>
    %50 = arith.cmpi eq, %19, %49 : vector<16x128xi32>
    %51 = arith.extui %50 : vector<16x128xi1> to vector<16x128xi32>
    %52 = arith.sitofp %51 : vector<16x128xi32> to vector<16x128xf32>
    %cst_20 = arith.constant dense<0.000000e+00> : vector<16x128xf32>
    %53 = tpu.matmul %52, %17, %cst_20 {dimension_numbers = #tpu.dot_dimension_numbers<[1], [0], [0], [1], [0, 0, 1, 1], [], []>} : vector<16x128xf32>, vector<128x128xf32>, vector<16x128xf32> -> vector<16x128xf32>
    %54 = arith.maximumf %45, %53 : vector<16x128xf32>
    %c8_i32_21 = arith.constant 8 : i32
    %55 = vector.broadcast %c8_i32_21 : i32 to vector<16x128xi32>
    %56 = arith.muli %18, %55 : vector<16x128xi32>
    %c4_i32 = arith.constant 4 : i32
    %57 = vector.broadcast %c4_i32 : i32 to vector<16x128xi32>
    %58 = arith.addi %56, %57 : vector<16x128xi32>
    %59 = arith.cmpi eq, %19, %58 : vector<16x128xi32>
    %60 = arith.extui %59 : vector<16x128xi1> to vector<16x128xi32>
    %61 = arith.sitofp %60 : vector<16x128xi32> to vector<16x128xf32>
    %cst_22 = arith.constant dense<0.000000e+00> : vector<16x128xf32>
    %62 = tpu.matmul %61, %17, %cst_22 {dimension_numbers = #tpu.dot_dimension_numbers<[1], [0], [0], [1], [0, 0, 1, 1], [], []>} : vector<16x128xf32>, vector<128x128xf32>, vector<16x128xf32> -> vector<16x128xf32>
    %63 = arith.maximumf %54, %62 : vector<16x128xf32>
    %c8_i32_23 = arith.constant 8 : i32
    %64 = vector.broadcast %c8_i32_23 : i32 to vector<16x128xi32>
    %65 = arith.muli %18, %64 : vector<16x128xi32>
    %c5_i32 = arith.constant 5 : i32
    %66 = vector.broadcast %c5_i32 : i32 to vector<16x128xi32>
    %67 = arith.addi %65, %66 : vector<16x128xi32>
    %68 = arith.cmpi eq, %19, %67 : vector<16x128xi32>
    %69 = arith.extui %68 : vector<16x128xi1> to vector<16x128xi32>
    %70 = arith.sitofp %69 : vector<16x128xi32> to vector<16x128xf32>
    %cst_24 = arith.constant dense<0.000000e+00> : vector<16x128xf32>
    %71 = tpu.matmul %70, %17, %cst_24 {dimension_numbers = #tpu.dot_dimension_numbers<[1], [0], [0], [1], [0, 0, 1, 1], [], []>} : vector<16x128xf32>, vector<128x128xf32>, vector<16x128xf32> -> vector<16x128xf32>
    %72 = arith.maximumf %63, %71 : vector<16x128xf32>
    %c8_i32_25 = arith.constant 8 : i32
    %73 = vector.broadcast %c8_i32_25 : i32 to vector<16x128xi32>
    %74 = arith.muli %18, %73 : vector<16x128xi32>
    %c6_i32 = arith.constant 6 : i32
    %75 = vector.broadcast %c6_i32 : i32 to vector<16x128xi32>
    %76 = arith.addi %74, %75 : vector<16x128xi32>
    %77 = arith.cmpi eq, %19, %76 : vector<16x128xi32>
    %78 = arith.extui %77 : vector<16x128xi1> to vector<16x128xi32>
    %79 = arith.sitofp %78 : vector<16x128xi32> to vector<16x128xf32>
    %cst_26 = arith.constant dense<0.000000e+00> : vector<16x128xf32>
    %80 = tpu.matmul %79, %17, %cst_26 {dimension_numbers = #tpu.dot_dimension_numbers<[1], [0], [0], [1], [0, 0, 1, 1], [], []>} : vector<16x128xf32>, vector<128x128xf32>, vector<16x128xf32> -> vector<16x128xf32>
    %81 = arith.maximumf %72, %80 : vector<16x128xf32>
    %c8_i32_27 = arith.constant 8 : i32
    %82 = vector.broadcast %c8_i32_27 : i32 to vector<16x128xi32>
    %83 = arith.muli %18, %82 : vector<16x128xi32>
    %c7_i32 = arith.constant 7 : i32
    %84 = vector.broadcast %c7_i32 : i32 to vector<16x128xi32>
    %85 = arith.addi %83, %84 : vector<16x128xi32>
    %86 = arith.cmpi eq, %19, %85 : vector<16x128xi32>
    %87 = arith.extui %86 : vector<16x128xi1> to vector<16x128xi32>
    %88 = arith.sitofp %87 : vector<16x128xi32> to vector<16x128xf32>
    %cst_28 = arith.constant dense<0.000000e+00> : vector<16x128xf32>
    %89 = tpu.matmul %88, %17, %cst_28 {dimension_numbers = #tpu.dot_dimension_numbers<[1], [0], [0], [1], [0, 0, 1, 1], [], []>} : vector<16x128xf32>, vector<128x128xf32>, vector<16x128xf32> -> vector<16x128xf32>
    %90 = arith.maximumf %81, %89 : vector<16x128xf32>
    %cst_29 = arith.constant 0.000000e+00 : f32
    %91 = vector.broadcast %cst_29 : f32 to vector<8x128xf32>
    %c0_30 = arith.constant 0 : index
    %c0_31 = arith.constant 0 : index
    %92 = vector.load %arg9[%c0_30, %c0_31] : memref<32x128xf32, #tpu.memory_space<vmem>>, vector<8x128xf32>
    tpu.vector_store %arg9[%c0_30, %c0_31], %91 {strides = array<i32>} : memref<32x128xf32, #tpu.memory_space<vmem>>, vector<8x128xf32>,
    %c24 = arith.constant 24 : index
    %c0_32 = arith.constant 0 : index
    %93 = vector.load %arg9[%c24, %c0_32] : memref<32x128xf32, #tpu.memory_space<vmem>>, vector<8x128xf32>
    tpu.vector_store %arg9[%c24, %c0_32], %91 {strides = array<i32>} : memref<32x128xf32, #tpu.memory_space<vmem>>, vector<8x128xf32>,
    %c8 = arith.constant 8 : index
    %c0_33 = arith.constant 0 : index
    %94 = vector.load %arg9[%c8, %c0_33] : memref<32x128xf32, #tpu.memory_space<vmem>>, vector<16x128xf32>
    tpu.vector_store %arg9[%c8, %c0_33], %90 {strides = array<i32>} : memref<32x128xf32, #tpu.memory_space<vmem>>, vector<16x128xf32>,
    %c5 = arith.constant 5 : index
    %c0_34 = arith.constant 0 : index
    %95 = vector.load %arg9[%c5, %c0_34] : memref<32x128xf32, #tpu.memory_space<vmem>>, vector<16x128xf32>
    %c6 = arith.constant 6 : index
    %c0_35 = arith.constant 0 : index
    %96 = vector.load %arg9[%c6, %c0_35] : memref<32x128xf32, #tpu.memory_space<vmem>>, vector<16x128xf32>
    %c7 = arith.constant 7 : index
    %c0_36 = arith.constant 0 : index
    %97 = vector.load %arg9[%c7, %c0_36] : memref<32x128xf32, #tpu.memory_space<vmem>>, vector<16x128xf32>
    %c8_37 = arith.constant 8 : index
    %c0_38 = arith.constant 0 : index
    %98 = vector.load %arg9[%c8_37, %c0_38] : memref<32x128xf32, #tpu.memory_space<vmem>>, vector<16x128xf32>
    %c9 = arith.constant 9 : index
    %c0_39 = arith.constant 0 : index
    %99 = vector.load %arg9[%c9, %c0_39] : memref<32x128xf32, #tpu.memory_space<vmem>>, vector<16x128xf32>
    %c10 = arith.constant 10 : index
    %c0_40 = arith.constant 0 : index
    %100 = vector.load %arg9[%c10, %c0_40] : memref<32x128xf32, #tpu.memory_space<vmem>>, vector<16x128xf32>
    %c11 = arith.constant 11 : index
    %c0_41 = arith.constant 0 : index
    %101 = vector.load %arg9[%c11, %c0_41] : memref<32x128xf32, #tpu.memory_space<vmem>>, vector<16x128xf32>
    %c12 = arith.constant 12 : index
    %c0_42 = arith.constant 0 : index
    %102 = vector.load %arg9[%c12, %c0_42] : memref<32x128xf32, #tpu.memory_space<vmem>>, vector<16x128xf32>
    %103 = tpu.concatenate %95, %96, %97, %98, %99, %100, %101, %102 in 1 : vector<16x128xf32>, vector<16x128xf32>, vector<16x128xf32>, vector<16x128xf32>, vector<16x128xf32>, vector<16x128xf32>, vector<16x128xf32>, vector<16x128xf32> -> vector<16x1024xf32>
    %104 = arith.truncf %103 : vector<16x1024xf32> to vector<16x1024xbf16>
    %c0_43 = arith.constant 0 : index
    %c0_44 = arith.constant 0 : index
    %c0_45 = arith.constant 0 : index
    %105 = vector.load %arg4[%c0_43, %c0_44, %c0_45] : memref<3x1024x128xbf16, #tpu.memory_space<vmem>>, vector<1x1024x128xbf16>
    %106 = vector.shape_cast %105 : vector<1x1024x128xbf16> to vector<1024x128xbf16>
    %cst_46 = arith.constant dense<0.000000e+00> : vector<16x128xf32>
    %107 = tpu.matmul %104, %106, %cst_46 {dimension_numbers = #tpu.dot_dimension_numbers<[1], [0], [0], [1], [0, 0, 1, 1], [], []>} : vector<16x1024xbf16>, vector<1024x128xbf16>, vector<16x128xf32> -> vector<16x128xf32>
    %c0_47 = arith.constant 0 : index
    %c0_48 = arith.constant 0 : index
    %c0_49 = arith.constant 0 : index
    %108 = vector.load %arg5[%c0_47, %c0_48, %c0_49] : memref<3x1x128xf32, #tpu.memory_space<vmem>>, vector<1x1x128xf32>
    %109 = vector.shape_cast %108 : vector<1x1x128xf32> to vector<1x128xf32>
    %110 = vector.broadcast %109 : vector<1x128xf32> to vector<16x128xf32>
    %111 = arith.addf %107, %110 : vector<16x128xf32>
    %cst_50 = arith.constant 0.000000e+00 : f32
    %112 = vector.broadcast %cst_50 : f32 to vector<16x128xf32>
    %113 = arith.maximumf %111, %112 : vector<16x128xf32>
    %c8_51 = arith.constant 8 : index
    %c0_52 = arith.constant 0 : index
    %114 = vector.load %arg9[%c8_51, %c0_52] : memref<32x128xf32, #tpu.memory_space<vmem>>, vector<16x128xf32>
    tpu.vector_store %arg9[%c8_51, %c0_52], %113 {strides = array<i32>} : memref<32x128xf32, #tpu.memory_space<vmem>>, vector<16x128xf32>,
    %c5_53 = arith.constant 5 : index
    %c0_54 = arith.constant 0 : index
    %115 = vector.load %arg9[%c5_53, %c0_54] : memref<32x128xf32, #tpu.memory_space<vmem>>, vector<16x128xf32>
    %c6_55 = arith.constant 6 : index
    %c0_56 = arith.constant 0 : index
    %116 = vector.load %arg9[%c6_55, %c0_56] : memref<32x128xf32, #tpu.memory_space<vmem>>, vector<16x128xf32>
    %c7_57 = arith.constant 7 : index
    %c0_58 = arith.constant 0 : index
    %117 = vector.load %arg9[%c7_57, %c0_58] : memref<32x128xf32, #tpu.memory_space<vmem>>, vector<16x128xf32>
    %c8_59 = arith.constant 8 : index
    %c0_60 = arith.constant 0 : index
    %118 = vector.load %arg9[%c8_59, %c0_60] : memref<32x128xf32, #tpu.memory_space<vmem>>, vector<16x128xf32>
    %c9_61 = arith.constant 9 : index
    %c0_62 = arith.constant 0 : index
    %119 = vector.load %arg9[%c9_61, %c0_62] : memref<32x128xf32, #tpu.memory_space<vmem>>, vector<16x128xf32>
    %c10_63 = arith.constant 10 : index
    %c0_64 = arith.constant 0 : index
    %120 = vector.load %arg9[%c10_63, %c0_64] : memref<32x128xf32, #tpu.memory_space<vmem>>, vector<16x128xf32>
    %c11_65 = arith.constant 11 : index
    %c0_66 = arith.constant 0 : index
    %121 = vector.load %arg9[%c11_65, %c0_66] : memref<32x128xf32, #tpu.memory_space<vmem>>, vector<16x128xf32>
    %c12_67 = arith.constant 12 : index
    %c0_68 = arith.constant 0 : index
    %122 = vector.load %arg9[%c12_67, %c0_68] : memref<32x128xf32, #tpu.memory_space<vmem>>, vector<16x128xf32>
    %123 = tpu.concatenate %115, %116, %117, %118, %119, %120, %121, %122 in 1 : vector<16x128xf32>, vector<16x128xf32>, vector<16x128xf32>, vector<16x128xf32>, vector<16x128xf32>, vector<16x128xf32>, vector<16x128xf32>, vector<16x128xf32> -> vector<16x1024xf32>
    %124 = arith.truncf %123 : vector<16x1024xf32> to vector<16x1024xbf16>
    %c1_69 = arith.constant 1 : index
    %c0_70 = arith.constant 0 : index
    %c0_71 = arith.constant 0 : index
    %125 = vector.load %arg4[%c1_69, %c0_70, %c0_71] : memref<3x1024x128xbf16, #tpu.memory_space<vmem>>, vector<1x1024x128xbf16>
    %126 = vector.shape_cast %125 : vector<1x1024x128xbf16> to vector<1024x128xbf16>
    %cst_72 = arith.constant dense<0.000000e+00> : vector<16x128xf32>
    %127 = tpu.matmul %124, %126, %cst_72 {dimension_numbers = #tpu.dot_dimension_numbers<[1], [0], [0], [1], [0, 0, 1, 1], [], []>} : vector<16x1024xbf16>, vector<1024x128xbf16>, vector<16x128xf32> -> vector<16x128xf32>
    %c1_73 = arith.constant 1 : index
    %c0_74 = arith.constant 0 : index
    %c0_75 = arith.constant 0 : index
    %128 = vector.load %arg5[%c1_73, %c0_74, %c0_75] : memref<3x1x128xf32, #tpu.memory_space<vmem>>, vector<1x1x128xf32>
    %129 = vector.shape_cast %128 : vector<1x1x128xf32> to vector<1x128xf32>
    %130 = vector.broadcast %129 : vector<1x128xf32> to vector<16x128xf32>
    %131 = arith.addf %127, %130 : vector<16x128xf32>
    %cst_76 = arith.constant 0.000000e+00 : f32
    %132 = vector.broadcast %cst_76 : f32 to vector<16x128xf32>
    %133 = arith.maximumf %131, %132 : vector<16x128xf32>
    %c8_77 = arith.constant 8 : index
    %c0_78 = arith.constant 0 : index
    %134 = vector.load %arg9[%c8_77, %c0_78] : memref<32x128xf32, #tpu.memory_space<vmem>>, vector<16x128xf32>
    tpu.vector_store %arg9[%c8_77, %c0_78], %133 {strides = array<i32>} : memref<32x128xf32, #tpu.memory_space<vmem>>, vector<16x128xf32>,
    %c5_79 = arith.constant 5 : index
    %c0_80 = arith.constant 0 : index
    %135 = vector.load %arg9[%c5_79, %c0_80] : memref<32x128xf32, #tpu.memory_space<vmem>>, vector<16x128xf32>
    %c6_81 = arith.constant 6 : index
    %c0_82 = arith.constant 0 : index
    %136 = vector.load %arg9[%c6_81, %c0_82] : memref<32x128xf32, #tpu.memory_space<vmem>>, vector<16x128xf32>
    %c7_83 = arith.constant 7 : index
    %c0_84 = arith.constant 0 : index
    %137 = vector.load %arg9[%c7_83, %c0_84] : memref<32x128xf32, #tpu.memory_space<vmem>>, vector<16x128xf32>
    %c8_85 = arith.constant 8 : index
    %c0_86 = arith.constant 0 : index
    %138 = vector.load %arg9[%c8_85, %c0_86] : memref<32x128xf32, #tpu.memory_space<vmem>>, vector<16x128xf32>
    %c9_87 = arith.constant 9 : index
    %c0_88 = arith.constant 0 : index
    %139 = vector.load %arg9[%c9_87, %c0_88] : memref<32x128xf32, #tpu.memory_space<vmem>>, vector<16x128xf32>
    %c10_89 = arith.constant 10 : index
    %c0_90 = arith.constant 0 : index
    %140 = vector.load %arg9[%c10_89, %c0_90] : memref<32x128xf32, #tpu.memory_space<vmem>>, vector<16x128xf32>
    %c11_91 = arith.constant 11 : index
    %c0_92 = arith.constant 0 : index
    %141 = vector.load %arg9[%c11_91, %c0_92] : memref<32x128xf32, #tpu.memory_space<vmem>>, vector<16x128xf32>
    %c12_93 = arith.constant 12 : index
    %c0_94 = arith.constant 0 : index
    %142 = vector.load %arg9[%c12_93, %c0_94] : memref<32x128xf32, #tpu.memory_space<vmem>>, vector<16x128xf32>
    %143 = tpu.concatenate %135, %136, %137, %138, %139, %140, %141, %142 in 1 : vector<16x128xf32>, vector<16x128xf32>, vector<16x128xf32>, vector<16x128xf32>, vector<16x128xf32>, vector<16x128xf32>, vector<16x128xf32>, vector<16x128xf32> -> vector<16x1024xf32>
    %144 = arith.truncf %143 : vector<16x1024xf32> to vector<16x1024xbf16>
    %c2 = arith.constant 2 : index
    %c0_95 = arith.constant 0 : index
    %c0_96 = arith.constant 0 : index
    %145 = vector.load %arg4[%c2, %c0_95, %c0_96] : memref<3x1024x128xbf16, #tpu.memory_space<vmem>>, vector<1x1024x128xbf16>
    %146 = vector.shape_cast %145 : vector<1x1024x128xbf16> to vector<1024x128xbf16>
    %cst_97 = arith.constant dense<0.000000e+00> : vector<16x128xf32>
    %147 = tpu.matmul %144, %146, %cst_97 {dimension_numbers = #tpu.dot_dimension_numbers<[1], [0], [0], [1], [0, 0, 1, 1], [], []>} : vector<16x1024xbf16>, vector<1024x128xbf16>, vector<16x128xf32> -> vector<16x128xf32>
    %c2_98 = arith.constant 2 : index
    %c0_99 = arith.constant 0 : index
    %c0_100 = arith.constant 0 : index
    %148 = vector.load %arg5[%c2_98, %c0_99, %c0_100] : memref<3x1x128xf32, #tpu.memory_space<vmem>>, vector<1x1x128xf32>
    %149 = vector.shape_cast %148 : vector<1x1x128xf32> to vector<1x128xf32>
    %150 = vector.broadcast %149 : vector<1x128xf32> to vector<16x128xf32>
    %151 = arith.addf %147, %150 : vector<16x128xf32>
    %cst_101 = arith.constant 0.000000e+00 : f32
    %152 = vector.broadcast %cst_101 : f32 to vector<16x128xf32>
    %153 = arith.maximumf %151, %152 : vector<16x128xf32>
    %154 = tpu.iota {dimensions = array<i32: 0>} : vector<4x16xi32>
    %155 = tpu.iota {dimensions = array<i32: 1>} : vector<4x16xi32>
    %c4_i32_102 = arith.constant 4 : i32
    %156 = vector.broadcast %c4_i32_102 : i32 to vector<4x16xi32>
    %157 = arith.muli %154, %156 : vector<4x16xi32>
    %c0_i32_103 = arith.constant 0 : i32
    %158 = vector.broadcast %c0_i32_103 : i32 to vector<4x16xi32>
    %159 = arith.addi %157, %158 : vector<4x16xi32>
    %160 = arith.cmpi eq, %155, %159 : vector<4x16xi32>
    %161 = arith.extui %160 : vector<4x16xi1> to vector<4x16xi32>
    %162 = arith.sitofp %161 : vector<4x16xi32> to vector<4x16xf32>
    %cst_104 = arith.constant dense<0.000000e+00> : vector<4x128xf32>
    %163 = tpu.matmul %162, %153, %cst_104 {dimension_numbers = #tpu.dot_dimension_numbers<[1], [0], [0], [1], [0, 0, 1, 1], [], []>} : vector<4x16xf32>, vector<16x128xf32>, vector<4x128xf32> -> vector<4x128xf32>
    %c4_i32_105 = arith.constant 4 : i32
    %164 = vector.broadcast %c4_i32_105 : i32 to vector<4x16xi32>
    %165 = arith.muli %154, %164 : vector<4x16xi32>
    %c1_i32_106 = arith.constant 1 : i32
    %166 = vector.broadcast %c1_i32_106 : i32 to vector<4x16xi32>
    %167 = arith.addi %165, %166 : vector<4x16xi32>
    %168 = arith.cmpi eq, %155, %167 : vector<4x16xi32>
    %169 = arith.extui %168 : vector<4x16xi1> to vector<4x16xi32>
    %170 = arith.sitofp %169 : vector<4x16xi32> to vector<4x16xf32>
    %cst_107 = arith.constant dense<0.000000e+00> : vector<4x128xf32>
    %171 = tpu.matmul %170, %153, %cst_107 {dimension_numbers = #tpu.dot_dimension_numbers<[1], [0], [0], [1], [0, 0, 1, 1], [], []>} : vector<4x16xf32>, vector<16x128xf32>, vector<4x128xf32> -> vector<4x128xf32>
    %172 = arith.maximumf %163, %171 : vector<4x128xf32>
    %c4_i32_108 = arith.constant 4 : i32
    %173 = vector.broadcast %c4_i32_108 : i32 to vector<4x16xi32>
    %174 = arith.muli %154, %173 : vector<4x16xi32>
    %c2_i32_109 = arith.constant 2 : i32
    %175 = vector.broadcast %c2_i32_109 : i32 to vector<4x16xi32>
    %176 = arith.addi %174, %175 : vector<4x16xi32>
    %177 = arith.cmpi eq, %155, %176 : vector<4x16xi32>
    %178 = arith.extui %177 : vector<4x16xi1> to vector<4x16xi32>
    %179 = arith.sitofp %178 : vector<4x16xi32> to vector<4x16xf32>
    %cst_110 = arith.constant dense<0.000000e+00> : vector<4x128xf32>
    %180 = tpu.matmul %179, %153, %cst_110 {dimension_numbers = #tpu.dot_dimension_numbers<[1], [0], [0], [1], [0, 0, 1, 1], [], []>} : vector<4x16xf32>, vector<16x128xf32>, vector<4x128xf32> -> vector<4x128xf32>
    %181 = arith.maximumf %172, %180 : vector<4x128xf32>
    %c4_i32_111 = arith.constant 4 : i32
    %182 = vector.broadcast %c4_i32_111 : i32 to vector<4x16xi32>
    %183 = arith.muli %154, %182 : vector<4x16xi32>
    %c3_i32_112 = arith.constant 3 : i32
    %184 = vector.broadcast %c3_i32_112 : i32 to vector<4x16xi32>
    %185 = arith.addi %183, %184 : vector<4x16xi32>
    %186 = arith.cmpi eq, %155, %185 : vector<4x16xi32>
    %187 = arith.extui %186 : vector<4x16xi1> to vector<4x16xi32>
    %188 = arith.sitofp %187 : vector<4x16xi32> to vector<4x16xf32>
    %cst_113 = arith.constant dense<0.000000e+00> : vector<4x128xf32>
    %189 = tpu.matmul %188, %153, %cst_113 {dimension_numbers = #tpu.dot_dimension_numbers<[1], [0], [0], [1], [0, 0, 1, 1], [], []>} : vector<4x16xf32>, vector<16x128xf32>, vector<4x128xf32> -> vector<4x128xf32>
    %190 = arith.maximumf %181, %189 : vector<4x128xf32>
    %191 = arith.truncf %190 : vector<4x128xf32> to vector<4x128xbf16>
    %c0_114 = arith.constant 0 : index
    %c0_115 = arith.constant 0 : index
    %192 = vector.load %arg6[%c0_114, %c0_115] : memref<128x128xbf16, #tpu.memory_space<vmem>>, vector<128x128xbf16>
    %cst_116 = arith.constant dense<0.000000e+00> : vector<4x128xf32>
    %193 = tpu.matmul %191, %192, %cst_116 {dimension_numbers = #tpu.dot_dimension_numbers<[1], [0], [0], [1], [0, 0, 1, 1], [], []>} : vector<4x128xbf16>, vector<128x128xbf16>, vector<4x128xf32> -> vector<4x128xf32>
    %c0_117 = arith.constant 0 : index
    %c0_118 = arith.constant 0 : index
    %194 = vector.load %arg7[%c0_117, %c0_118] : memref<1x128xf32, #tpu.memory_space<vmem>>, vector<1x128xf32>
    %195 = vector.broadcast %194 : vector<1x128xf32> to vector<4x128xf32>
    %196 = arith.addf %193, %195 : vector<4x128xf32>
    %c0_119 = arith.constant 0 : index
    %c0_120 = arith.constant 0 : index
    %c0_121 = arith.constant 0 : index
    %197 = vector.load %arg8[%c0_119, %c0_120, %c0_121] : memref<1x4x128xf32, #tpu.memory_space<vmem>>, vector<1x4x128xf32>
    %198 = vector.shape_cast %197 : vector<1x4x128xf32> to vector<4x128xf32>
    %199 = vector.shape_cast %196 : vector<4x128xf32> to vector<1x4x128xf32>
    tpu.vector_store %arg8[%c0_119, %c0_120, %c0_121], %199 {strides = array<i32>} : memref<1x4x128xf32, #tpu.memory_space<vmem>>, vector<1x4x128xf32>,
    return
  }
  func.func @transform_0(%arg0: i32) -> (i32, i32, i32) {
    %c0_i32 = arith.constant 0 : i32
    %c0_i32_0 = arith.constant 0 : i32
    %c0_i32_1 = arith.constant 0 : i32
    return %arg0, %c0_i32, %c0_i32_0 : i32, i32, i32
  }
  func.func @transform_1(%arg0: i32) -> (i32, i32, i32) {
    %c0_i32 = arith.constant 0 : i32
    %c0_i32_0 = arith.constant 0 : i32
    %c0_i32_1 = arith.constant 0 : i32
    %c0_i32_2 = arith.constant 0 : i32
    return %c0_i32, %c0_i32_0, %c0_i32_1 : i32, i32, i32
  }
  func.func @transform_2(%arg0: i32) -> (i32, i32) {
    %c0_i32 = arith.constant 0 : i32
    %c0_i32_0 = arith.constant 0 : i32
    %c0_i32_1 = arith.constant 0 : i32
    return %c0_i32, %c0_i32_0 : i32, i32
  }
  func.func @transform_3(%arg0: i32) -> (i32, i32, i32) {
    %c0_i32 = arith.constant 0 : i32
    %c0_i32_0 = arith.constant 0 : i32
    %c0_i32_1 = arith.constant 0 : i32
    %c0_i32_2 = arith.constant 0 : i32
    return %c0_i32, %c0_i32_0, %c0_i32_1 : i32, i32, i32
  }
  func.func @transform_4(%arg0: i32) -> (i32, i32, i32) {
    %c0_i32 = arith.constant 0 : i32
    %c0_i32_0 = arith.constant 0 : i32
    %c0_i32_1 = arith.constant 0 : i32
    %c0_i32_2 = arith.constant 0 : i32
    return %c0_i32, %c0_i32_0, %c0_i32_1 : i32, i32, i32
  }
  func.func @transform_5(%arg0: i32) -> (i32, i32) {
    %c0_i32 = arith.constant 0 : i32
    %c0_i32_0 = arith.constant 0 : i32
    %c0_i32_1 = arith.constant 0 : i32
    return %c0_i32, %c0_i32_0 : i32, i32
  }
  func.func @transform_6(%arg0: i32) -> (i32, i32) {
    %c0_i32 = arith.constant 0 : i32
    %c0_i32_0 = arith.constant 0 : i32
    %c0_i32_1 = arith.constant 0 : i32
    return %c0_i32, %c0_i32_0 : i32, i32
  }
  func.func @transform_7(%arg0: i32) -> (i32, i32, i32) {
    %c0_i32 = arith.constant 0 : i32
    %c0_i32_0 = arith.constant 0 : i32
    %c0_i32_1 = arith.constant 0 : i32
    return %arg0, %c0_i32, %c0_i32_0 : i32, i32, i32
  }
}

</mosaic_0001>

<bundles_post_ra>
// kernel: tinysleepnet_feature_forward.1
= control target key start
LH: loop header
LB: loop body
LE: loop exit
PB: predicated region body
PF: predicated region fallthrough
CT: control target
= control target key end

     0   :  { %12 = vsyncpa [#allocation4], 0  ;;  %s6896_s0 = inlined_call_operand.vmem [shape: f32[2,129,25], index: 0, kind: input, shape index: {}]   ;;  %s6897_s1 = inlined_call_operand.vmem [shape: bf16[2,25,128], index: 1, kind: input, shape index: {}]   ;;  %s6898_s2 = inlined_call_operand.vmem [shape: f32[1,128], index: 2, kind: input, shape index: {}]   ;;  %s6899_s3 = inlined_call_operand.vmem [shape: bf16[3,1024,128], index: 3, kind: input, shape index: {}]   ;;  %s6900_s4 = inlined_call_operand.vmem [shape: f32[3,1,128], index: 4, kind: input, shape index: {}]   ;;  %s6901_s5 = inlined_call_operand.vmem [shape: bf16[128,128], index: 5, kind: input, shape index: {}]   ;;  %s6902_s6 = inlined_call_operand.vmem [shape: f32[1,128], index: 6, kind: input, shape index: {}]   ;;  %s6903_s7 = inlined_call_operand.hbm [shape: f32[2,4,128], index: 7, kind: output, shape index: {}]  }
   0x1   :  { %14 = vsyncpa [#allocation4 + $0x1], 0  ;;  %s5679_s24 = smov 0   ;;  %s5681_s25 = smov 0  }
   0x2   :  { %s5683_s26 = smov 0   ;;  %s5685_s27 = smov 0  }
   0x3 LB: > { %s5700_s28 = sadd.s32 4294967295, %s5632_s27   ;;  %s3969_s29 = sadd.s32 4294967294, %s5632_s27   ;;  %s5632_s27 = sphi %s5685_s27, %s6909_s27   ;;  %s5628_s26 = sphi %s5683_s26, %s6908_s26   ;;  %s5624_s25 = sphi %s5681_s25, %s6907_s25   ;;  %s5620_s24 = sphi %s5679_s24, %s6906_s24  }
   0x4   : > { %s5704_s30 = sadd.s32 1, %s5632_s27   ;;  %s179_s8 = sadd.s32 1, %s5628_s26 }
   0x5   : > { %s176_s9 = ssub.s32 %s5632_s27, %s5704_s30  ;;  %p189_p0 = scmp.ne.s32.totalorder %s5628_s26, %s5624_s25 }
   0x6   : > { %p177_p1 = scmp.eq.s32.totalorder %s176_s9, 0  ;;  %p190_p2 = scmp.eq.s32.totalorder %s5700_s28, 1 }
   0x7   : > { %p195_p3 = scmp.ne.s32.totalorder %s5624_s25, %s5620_s24  ;;  %p196_p4 = scmp.eq.s32.totalorder %s3969_s29, 1 }
   0x8   : > { %s5715_s10 = scalar_select %p177_p1, %s5628_s26, %s179_s8  }
   0x9   : > { %p5717_p5 = por %p190_p2, %p189_p0  ;;  %p5721_p6 = por %p196_p4, %p195_p3 }
   0xa   : > { %p3972_p7 = scmp.ge.s32.totalorder %s5632_s27, 1  ;;  %p240_p8 = scmp.lt.s32.totalorder %s5632_s27, 3 }
   0xc   : > { %p241_p9 = pnand %p3972_p7, %p240_p8 }
   0xd   : > { %p272_p10 = scmp.lt.s32.totalorder (!%p241_p9), %s5700_s28, 1  ;;  %s269_s14 = sand.u32 (!%p241_p9), 1, %s5624_s25  }
   0xe   : > { %244 = sbr.rel (%p241_p9) target bundleno = 1790 (0x6fe), region = 48  ;;  %s3973_s15 = sshll.u32 (!%p241_p9), %s269_s14, 2 }
   0xf   : > { %s4503_s18 = sshll.u32 (!%p241_p9), %s5700_s28, 6  ;;  %s3897_s29 = scalar_lea.sflag (!%p241_p9), [#allocation4], %s269_s14 }
  0x13   : > { %v5367_v0 = vld [vmem:[%s6897_s1 + $0x18] sm:$0x1f]   ;;  %vm371_vm0 = vcmask 1043456   ;;  %vm372_vm1 = vcmask 1044480   ;;  %v5634_v1 = vmov 65535   ;;  %v5369_v6 = vld [vmem:[%s6897_s1 + $0x10] sm:$0xff]   ;;  %v649_v57 = vlaneseq }
  0x14   : > { %v373_v2 = vsel %vm371_vm0, 4294967295, %v5634_v1  ;;  %v5368_v3 = vld [vmem:[%s6897_s1 + $0x8] sm:$0x1f]   ;;  %s273_s19 = scalar_select %p272_p10, %s5700_s28, 1  ;;  %vm346_vm2 = vcmask 203776   ;;  %v5370_v17 = vld [vmem:[%s6897_s1] sm:$0xff]  }
  0x15   : > { %v374_v4 = vsel %vm372_vm1, %v373_v2, 0  ;;  %v5794_v58 = vshrl.u32 %v649_v57, 7  ;;  %v5799_v60 = vand.u32 127, %v649_v57  ;;  %v5635_v62 = vmov 1.0   ;;  %s5638_s28 = smov [#allocation3]  }
  0x16   : > { %v376_v5 = vand.u32 %v5367_v0, %v374_v4  ;;  %s5323_s20 = smul.u32 136, %s273_s19  ;;  %v511_v7 = vand.u32 %v5368_v3, %v374_v4  ;;  %s271_s19 = scalar_lea.vmem [#allocation3], %s3973_s15 }
  0x17   : > { %v5797_v59 = vmul.u32 8, %v5794_v58  ;;  %s5576_s9 = sshll.u32 %s5638_s28, 4  ;;  %s5577_s9 = int_to_ptr.vmem [resolvable:$false] %s5576_s9 }
  0x18   : > { %4955 = vmatprep.subr.bf16.mxu1 %v376_v5  ;;  %s5741_s23 = scalar_lea.vmem %s6896_s0, %s5323_s20  ;;  %s3910_s20 = sshll.u32 %s271_s19, 4  ;;  %s6857_s20 = int_to_ptr.vmem [resolvable:$true] %s3910_s20 }
  0x19   : > { %4956 = vmatpush3.bf16.msra.mxu1 %v376_v5  ;;  %v302_v8 = vld [vmem:[%s5741_s23 + $0x1] sm:$0xff]  ;;  %v303_v9 = vld [vmem:[%s5741_s23 + $0x9] sm:$0xff]  ;;  %v304_v10 = vld [vmem:[%s5741_s23 + $0x11] sm:$0xff]  ;;  %v737_v61 = vadd.s32 1, %v5797_v59  ;;  %vm656_vm3 = vcmp.eq.s32.totalorder %v5799_v60, %v5797_v59  ;;  %s5572_s8 = scalar_lea.vmem %s6857_s20, 64  ;;  %s5578_s13 = scalar_lea.vmem %s5577_s9, 128 }
  0x1a   : > { %4957 = vmatprep.subr.bf16.mxu1 %v5369_v6  ;;  %v318_v11 = vpack.c.bf16 %v303_v9, %v302_v8  ;;  %v305_v12 = vld [vmem:[%s5741_s23 + $0x19] sm:$0xff]  ;;  %v306_v13 = vld [vmem:[%s5741_s23 + $0x21] sm:$0xff]  ;;  %v307_v14 = vld [vmem:[%s5741_s23 + $0x29] sm:$0xff]  ;;  %5027 = vmatprep.mubr.msk.f32.mxu0 %vm656_vm3, %v5635_v62  ;;  %vm5637_vm3 = vmmov 0   ;;  %p5573_p11 = scmp.ne.s32.totalorder %s6857_s20, %s5572_s8  ;;  %p5579_p0 = scmp.lt.s32.totalorder %s6857_s20, %s5577_s9 }
  0x1b   : > { %v319_v15 = vpack.c.bf16 %v305_v12, %v304_v10  ;;  %v320_v16 = vpack.c.bf16 %v307_v14, %v306_v13  ;;  %v308_v18 = vld [vmem:[%s5741_s23 + $0x31] sm:$0xff]  ;;  %v309_v19 = vld [vmem:[%s5741_s23 + $0x39] sm:$0xff]  ;;  %v310_v20 = vld [vmem:[%s5741_s23 + $0x41] sm:$0xff]  ;;  %vm739_vm4 = vcmp.eq.s32.totalorder %v5799_v60, %v737_v61  ;;  %p5580_p1 = scmp.lt.s32.totalorder %s5578_s13, %s5572_s8 }
  0x1c   : > { %4959 = vmatprep.mubr.msk.bf16.mxu1 %vm346_vm2, %v318_v11  ;;  %v311_v21 = vld [vmem:[%s5741_s23 + $0x49] sm:$0xff]  ;;  %v321_v22 = vpack.c.bf16 %v309_v19, %v308_v18  ;;  %v312_v24 = vld [vmem:[%s5741_s23 + $0x51] sm:$0xff]  ;;  %v313_v25 = vld [vmem:[%s5741_s23 + $0x59] sm:$0xff]  ;;  %p5574_p12 = pnand %p5573_p11, %p5717_p5 }
  0x1d   : > { %4958 = vmatpush3.bf16.msra.mxu1 %v5369_v6  ;;  %v322_v23 = vpack.c.bf16 %v311_v21, %v310_v20  ;;  %v314_v26 = vld [vmem:[%s5741_s23 + $0x61] sm:$0xff]  ;;  %v315_v27 = vld [vmem:[%s5741_s23 + $0x69] sm:$0xff]  ;;  %v323_v28 = vpack.c.bf16 %v313_v25, %v312_v24  ;;  %v316_v30 = vld [vmem:[%s5741_s23 + $0x71] sm:$0xff]  ;;  %p5581_p2 = por %p5580_p1, %p5579_p0 }
  0x1e   : > { %4975 = vmatprep.subr.bf16.mxu1 %v511_v7  ;;  %v324_v29 = vpack.c.bf16 %v315_v27, %v314_v26  ;;  %v317_v31 = vld [vmem:[%s5741_s23 + $0x79] sm:$0xff]  ;;  %v279_v33 = vld [vmem:[%s5741_s23 + $0x8] sm:$0xff]  ;;  %v280_v36 = vld [vmem:[%s5741_s23 + $0x10] sm:$0xff]  ;;  %p5575_p13 = pneg %p5574_p12 }
  0x1f   : > { %v278_v32 = vld [vmem:[%s5741_s23] sm:$0xff]  ;;  %v325_v34 = vpack.c.bf16 %v317_v31, %v316_v30  ;;  %v281_v37 = vld [vmem:[%s5741_s23 + $0x18] sm:$0xff]  ;;  %v283_v39 = vld [vmem:[%s5741_s23 + $0x28] sm:$0xff] }
  0x20   : > { %4960 = vmatmul.mubr.msk.bf16.vlgmr.msra.gmra.mxu1 %vm346_vm2, %v319_v15  ;;  %v294_v35 = vpack.c.bf16 %v279_v33, %v278_v32  ;;  %v282_v38 = vld [vmem:[%s5741_s23 + $0x20] sm:$0xff]  ;;  %v295_v40 = vpack.c.bf16 %v281_v37, %v280_v36  ;;  %v284_v42 = vld [vmem:[%s5741_s23 + $0x30] sm:$0xff]  ;;  %v285_v43 = vld [vmem:[%s5741_s23 + $0x38] sm:$0xff]  ;;  %p5582_p3 = pnand %p5581_p2, %p5575_p13 }
  0x21   : > { %4976 = vmatpush3.bf16.msra.mxu1 %v511_v7  ;;  %4963 = vmatprep.mubr.msk.bf16.mxu1 %vm346_vm2, %v320_v16  ;;  %v296_v41 = vpack.c.bf16 %v283_v39, %v282_v38  ;;  %v286_v44 = vld [vmem:[%s5741_s23 + $0x40] sm:$0xff]  ;;  %v287_v45 = vld [vmem:[%s5741_s23 + $0x48] sm:$0xff]  ;;  %v297_v46 = vpack.c.bf16 %v285_v43, %v284_v42  ;;  %v288_v48 = vld [vmem:[%s5741_s23 + $0x50] sm:$0xff] }
  0x22   : > { %4977 = vmatprep.subr.bf16.mxu1 %v5370_v17  ;;  %v298_v47 = vpack.c.bf16 %v287_v45, %v286_v44  ;;  %v289_v49 = vld [vmem:[%s5741_s23 + $0x58] sm:$0xff]  ;;  %v290_v50 = vld [vmem:[%s5741_s23 + $0x60] sm:$0xff]  ;;  %v291_v51 = vld [vmem:[%s5741_s23 + $0x68] sm:$0xff] }
  0x23   : > { %v299_v52 = vpack.c.bf16 %v289_v49, %v288_v48  ;;  %v300_v53 = vpack.c.bf16 %v291_v51, %v290_v50  ;;  %v292_v54 = vld [vmem:[%s5741_s23 + $0x70] sm:$0xff]  ;;  %v293_v55 = vld [vmem:[%s5741_s23 + $0x78] sm:$0xff]  ;;  %v5834_v32 = vld [vmem:[%s6898_s2] ss:$0 sm:$0xff]  ;;  %s6855_s23 = scalar_lea.hbm %s6903_s7, %s4503_s18 }
  0x24   : > { %v301_v56 = vpack.c.bf16 %v293_v55, %v292_v54 }
  0x25   : > { %4978 = vmatpush3.bf16.msra.mxu1 %v5370_v17 }
  0x28   : > { %4964 = vmatmul.mubr.msk.bf16.gmra.mxu1 %vm346_vm2, %v321_v22 }
  0x29   : > { %4967 = vmatprep.mubr.msk.bf16.mxu1 %vm346_vm2, %v322_v23 }
  0x30   : > { %4968 = vmatmul.mubr.msk.bf16.gmra.mxu1 %vm346_vm2, %v323_v28 }
  0x31   : > { %4971 = vmatprep.mubr.msk.bf16.mxu1 %vm346_vm2, %v324_v29 }
  0x38   : > { %4972 = vmatmul.mubr.msk.bf16.gmra.mxu1 %vm346_vm2, %v325_v34 }
  0x39   : > { %4979 = vmatprep.mubr.msk.bf16.mxu1 %vm346_vm2, %v294_v35 }
  0x40   : > { %4980 = vmatmul.mubr.msk.bf16.vlgmr.msra.gmra.mxu1 %vm346_vm2, %v295_v40 }
  0x41   : > { %4983 = vmatprep.mubr.msk.bf16.mxu1 %vm346_vm2, %v296_v41 }
  0x48   : > { %4984 = vmatmul.mubr.msk.bf16.gmra.mxu1 %vm346_vm2, %v297_v46 }
  0x49   : > { %4987 = vmatprep.mubr.msk.bf16.mxu1 %vm346_vm2, %v298_v47 }
  0x50   : > { %4988 = vmatmul.mubr.msk.bf16.gmra.mxu1 %vm346_vm2, %v299_v52 }
  0x51   : > { %4991 = vmatprep.mubr.msk.bf16.mxu1 %vm346_vm2, %v300_v53 }
  0x58   : > { %4992 = vmatmul.mubr.msk.bf16.gmra.mxu1 %vm346_vm2, %v301_v56 }
  0x59   : > { %5062 = vmatprep.mubr.msk.f32.mxu1 %vm739_vm4, %v5635_v62 }
  0xe0   : > { %v5807_v63 = vpop.f32.mrf.mxu1 }
  0xe2   : > { %v5809_v0 = vpop.f32.mrf.mxu1 }
  0xe4   : > { %v5811_v1 = vpop.f32.mrf.mxu1 }
  0xe6   : > { %v5813_v2 = vpop.f32.mrf.mxu1 }
  0xe8   : > { %v5815_v3 = vpop.f32.mrf.mxu1 }
  0xea   : > { %v5817_v4 = vpop.f32.mrf.mxu1 }
  0xec   : > { %v4966_v5 = vpop.f32.mrf.mxu1 }
  0xee   : > { %v5819_v6 = vpop.f32.mrf.mxu1 }
  0xf0   : > { %v4969_v7 = vpop.f32.mrf.mxu1 }
  0xf2   : > { %v444_v8 = vpop.f32.mrf.mxu1 }
  0xf4   : > { %v4970_v9 = vpop.f32.mrf.mxu1 }
  0xf6   : > { %v447_v10 = vpop.f32.mrf.mxu1 }
  0xf8   : > { %v4973_v11 = vpop.f32.mrf.mxu1 }
  0xfa   : > { %v460_v12 = vpop.f32.mrf.mxu1 }
  0xfc   : > { %v4974_v13 = vpop.f32.mrf.mxu1 }
  0xfe   : > { %v463_v14 = vpop.f32.mrf.mxu1 }
 0x100   : > { %v5821_v15 = vpop.f32.mrf.mxu1 }
 0x102   : > { %v5823_v16 = vpop.f32.mrf.mxu1 }
 0x104   : > { %v5825_v17 = vpop.f32.mrf.mxu1 }
 0x106   : > { %v5827_v18 = vpop.f32.mrf.mxu1 }
 0x108   : > { %v4985_v19 = vpop.f32.mrf.mxu1 }
 0x109   : > { %v572_v53 = vadd.f32 %v4985_v19, %v5815_v3 }
 0x10a   : > { %v5829_v20 = vpop.f32.mrf.mxu1 }
 0x10b   : > { %v623_v3 = vadd.f32 %v5834_v32, %v572_v53  ;;  %v5392_v53 = vld [vmem:[%s6899_s3 + $0xd0] sm:$0xff]  }
 0x10c   : > { %v4986_v21 = vpop.f32.mrf.mxu1 }
 0x10d   : > { %v575_v50 = vadd.f32 %v4986_v21, %v4966_v5  ;;  %v564_v5 = vadd.f32 %v5829_v20, %v5817_v4  ;;  %v556_v4 = vadd.f32 %v5821_v15, %v5807_v63  ;;  %v548_v15 = vadd.f32 %v5823_v16, %v5809_v0 }
 0x10e   : > { %v566_v22 = vpop.f32.mrf.mxu1 }
 0x10f   : > { %v624_v56 = vadd.f32 %v5834_v32, %v575_v50  ;;  %v567_v57 = vadd.f32 %v566_v22, %v5819_v6  ;;  %v559_v6 = vadd.f32 %v5825_v17, %v5811_v1  ;;  %v651_v1 = vadd.s32 8, %v5794_v58  ;;  %v5387_v50 = vld [vmem:[%s6899_s3 + $0x58] sm:$0xff]  }
 0x110   : > { %v4989_v23 = vpop.f32.mrf.mxu1  ;;  %v617_v16 = vadd.f32 %v5834_v32, %v548_v15 }
 0x111   : > { %v588_v41 = vadd.f32 %v4989_v23, %v4969_v7  ;;  %v822_v23 = vadd.s32 2, %v5797_v59 }
 0x112   : > { %v579_v24 = vpop.f32.mrf.mxu1  ;;  %v5954_v22 = vmax.f32 %v617_v16, 0.0 }
 0x113   : > { %v627_v47 = vadd.f32 %v5834_v32, %v588_v41  ;;  %v580_v48 = vadd.f32 %v579_v24, %v444_v8  ;;  %v5896_v8 = vmax.f32 %v624_v56, 0.0  ;;  %vm824_vm7 = vcmp.eq.s32.totalorder %v5799_v60, %v822_v23  ;;  %v5379_v41 = vld [vmem:[%s6899_s3 + $0x68] sm:$0xff]   ;;  %v5393_v56 = vld [vmem:[%s6899_s3 + $0x10] sm:$0xff]  }
 0x114   : > { %v4990_v25 = vpop.f32.mrf.mxu1 }
 0x115   : > { %v591_v38 = vadd.f32 %v4990_v25, %v4970_v9  ;;  %v5870_v54 = vmax.f32 %v627_v47, 0.0  ;;  %v625_v55 = vadd.f32 %v5834_v32, %v580_v48  ;;  %v622_v9 = vadd.f32 %v5834_v32, %v567_v57  ;;  %v5385_v47 = vld [vmem:[%s6899_s3 + $0x20] sm:$0xff]  }
 0x116   : > { %v582_v26 = vpop.f32.mrf.mxu1  ;;  %v907_v25 = vadd.s32 3, %v5797_v59  ;;  %v5386_v48 = vld [vmem:[%s6899_s3 + $0xa0] sm:$0xff]   ;;  %v5636_v57 = vmov 0.0  }
 0x117   : > { %v628_v44 = vadd.f32 %v5834_v32, %v591_v38  ;;  %v583_v45 = vadd.f32 %v582_v26, %v447_v10  ;;  %v5888_v7 = vmax.f32 %v625_v55, 0.0  ;;  %v5905_v10 = vmax.f32 %v623_v3, 0.0  ;;  %v5376_v38 = vld [vmem:[%s6899_s3 + $0xf0] sm:$0xff]   ;;  %1332 = vst [vmem:[#allocation2] sm:$0xff] %v5636_v57  ;;  %1333 = vst [vmem:[#allocation2 + $0x18] sm:$0xff] %v5636_v57  ;;  %v5395_v3 = vld [vmem:[%s6899_s3 + $0x48] sm:$0xff]  }
 0x118   : > { %v4993_v27 = vpop.f32.mrf.mxu1  ;;  %v5916_v63 = vmax.f32 %v622_v9, 0.0  ;;  %vm909_vm9 = vcmp.eq.s32.totalorder %v5799_v60, %v907_v25  ;;  %v5394_v55 = vld [vmem:[%s6899_s3 + $0x90] sm:$0xff]   ;;  %v5402_v9 = vld [vmem:[%s6899_s3 + $0x80] sm:$0xff]  }
 0x119   : > { %v604_v29 = vadd.f32 %v4993_v27, %v4973_v11  ;;  %v5862_v51 = vmax.f32 %v628_v44, 0.0  ;;  %v626_v52 = vadd.f32 %v5834_v32, %v583_v45  ;;  %v621_v11 = vadd.f32 %v5834_v32, %v564_v5  ;;  %v5382_v44 = vld [vmem:[%s6899_s3 + $0xa8] sm:$0xff]   ;;  %v5383_v45 = vld [vmem:[%s6899_s3 + $0x60] sm:$0xff]   ;;  %v5410_v57 = vld [vmem:[%s6899_s3 + $0x1b0] sm:$0xff]  }
 0x11a   : > { %v595_v28 = vpop.f32.mrf.mxu1  ;;  %v992_v27 = vadd.s32 4, %v5797_v59  ;;  %v5397_v5 = vld [vmem:[%s6899_s3 + $0x8] sm:$0xff]  }
 0x11b   : > { %v631_v34 = vadd.f32 %v5834_v32, %v604_v29  ;;  %v596_v35 = vadd.f32 %v595_v28, %v460_v12  ;;  %v5879_v61 = vmax.f32 %v626_v52, 0.0  ;;  %v620_v12 = vadd.f32 %v5834_v32, %v559_v6  ;;  %v5389_v52 = vld [vmem:[%s6899_s3 + $0x18] sm:$0xff]   ;;  %v5399_v6 = vld [vmem:[%s6899_s3 + $0x40] sm:$0xff]  }
 0x11c   : > { %v4994_v30 = vpop.f32.mrf.mxu1  ;;  %v5925_v17 = vmax.f32 %v621_v11, 0.0  ;;  %v1077_v29 = vadd.s32 5, %v5797_v59  ;;  %vm994_vm11 = vcmp.eq.s32.totalorder %v5799_v60, %v992_v27  ;;  %v5403_v11 = vld [vmem:[%s6899_s3 + $0x178] sm:$0xff]  }
 0x11d   : > { %v607_v31 = vadd.f32 %v4994_v30, %v4974_v13  ;;  %v5841_v42 = vmax.f32 %v631_v34, 0.0  ;;  %v629_v43 = vadd.f32 %v5834_v32, %v596_v35  ;;  %v551_v13 = vadd.f32 %v5827_v18, %v5813_v2  ;;  %v5372_v35 = vld [vmem:[%s6899_s3 + $0xf8] sm:$0xff]  }
 0x11e   : > { %v598_v33 = vpop.f32.mrf.mxu1  ;;  %v5931_v2 = vmul.u32 8, %v651_v1  ;;  %v5933_v18 = vmax.f32 %v620_v12, 0.0  ;;  %vm1079_vm13 = vcmp.eq.s32.totalorder %v5799_v60, %v1077_v29 }
 0x11f   : > { %v632_v36 = vadd.f32 %v5834_v32, %v607_v31  ;;  %v599_v37 = vadd.f32 %v598_v33, %v463_v14  ;;  %v5856_v49 = vmax.f32 %v629_v43, 0.0  ;;  %v619_v14 = vadd.f32 %v5834_v32, %v556_v4  ;;  %v5381_v43 = vld [vmem:[%s6899_s3 + $0x28] sm:$0xff]   ;;  %v5401_v4 = vld [vmem:[%s6899_s3] sm:$0xff]  }
 0x120   : > { %v618_v19 = vadd.f32 %v5834_v32, %v551_v13  ;;  %v738_v20 = vadd.s32 1, %v5931_v2  ;;  %vm657_vm5 = vcmp.eq.s32.totalorder %v5799_v60, %v5931_v2  ;;  %v823_v24 = vadd.s32 2, %v5931_v2 }
 0x121   : > { %v5838_v39 = vmax.f32 %v632_v36, 0.0  ;;  %v630_v40 = vadd.f32 %v5834_v32, %v599_v37  ;;  %v5940_v0 = vmax.f32 %v619_v14, 0.0  ;;  %v908_v26 = vadd.s32 3, %v5931_v2  ;;  %v5373_v36 = vld [vmem:[%s6899_s3 + $0x38] sm:$0xff]  }
 0x122   : > { %v5948_v21 = vmax.f32 %v618_v19, 0.0  ;;  %vm740_vm6 = vcmp.eq.s32.totalorder %v5799_v60, %v738_v20  ;;  %vm825_vm8 = vcmp.eq.s32.totalorder %v5799_v60, %v823_v24  ;;  %v993_v28 = vadd.s32 4, %v5931_v2  ;;  %v5374_v37 = vld [vmem:[%s6899_s3 + $0xb8] sm:$0xff]  }
 0x123   : > { %4995 = vmatprep.subr.mxu0 %v5838_v39  ;;  %5030 = vmatprep.subr.mxu1 %v5838_v39  ;;  %v5849_v46 = vmax.f32 %v630_v40, 0.0  ;;  %vm910_vm10 = vcmp.eq.s32.totalorder %v5799_v60, %v908_v26  ;;  %v1078_v30 = vadd.s32 5, %v5931_v2  ;;  %v1162_v31 = vadd.s32 6, %v5797_v59  ;;  %v5378_v40 = vld [vmem:[%s6899_s3 + $0xb0] sm:$0xff]  }
 0x124   : > { %4996 = vmatpush3.msra.mxu0 %v5838_v39  ;;  %5031 = vmatpush3.msra.mxu1 %v5838_v39  ;;  %vm995_vm12 = vcmp.eq.s32.totalorder %v5799_v60, %v993_v28  ;;  %v1247_v32 = vadd.s32 7, %v5797_v59  ;;  %v1163_v33 = vadd.s32 6, %v5931_v2  ;;  %v1248_v34 = vadd.s32 7, %v5931_v2  ;;  %v5371_v59 = vld [vmem:[%s6899_s3 + $0x78] sm:$0xff]  }
 0x125   : > { %4997 = vmatprep.subr.mxu0 %v5841_v42  ;;  %5032 = vmatprep.subr.mxu1 %v5841_v42  ;;  %vm1080_vm14 = vcmp.eq.s32.totalorder %v5799_v60, %v1078_v30  ;;  %vm1164_vm15 = vcmp.eq.s32.totalorder %v5799_v60, %v1162_v31 }
 0x126   : > { %4998 = vmatpush3.msra.mxu0 %v5841_v42  ;;  %5033 = vmatpush3.msra.mxu1 %v5841_v42  ;;  %vm1249_vm0 = vcmp.eq.s32.totalorder %v5799_v60, %v1247_v32  ;;  %vm1165_vm1 = vcmp.eq.s32.totalorder %v5799_v60, %v1163_v33  ;;  %vm1250_vm2 = vcmp.eq.s32.totalorder %v5799_v60, %v1248_v34 }
 0x127   : > { %4999 = vmatprep.subr.mxu0 %v5849_v46  ;;  %5034 = vmatprep.subr.mxu1 %v5849_v46 }
 0x128   : > { %5000 = vmatpush3.msra.mxu0 %v5849_v46  ;;  %5035 = vmatpush3.msra.mxu1 %v5849_v46 }
 0x129   : > { %5001 = vmatprep.subr.mxu0 %v5856_v49  ;;  %5036 = vmatprep.subr.mxu1 %v5856_v49 }
 0x12a   : > { %5002 = vmatpush3.msra.mxu0 %v5856_v49  ;;  %5037 = vmatpush3.msra.mxu1 %v5856_v49 }
 0x12b   : > { %5003 = vmatprep.subr.mxu0 %v5862_v51  ;;  %5038 = vmatprep.subr.mxu1 %v5862_v51 }
 0x12c   : > { %5004 = vmatpush3.msra.mxu0 %v5862_v51  ;;  %5039 = vmatpush3.msra.mxu1 %v5862_v51 }
 0x12d   : > { %5005 = vmatprep.subr.mxu0 %v5870_v54  ;;  %5040 = vmatprep.subr.mxu1 %v5870_v54 }
 0x12e   : > { %5006 = vmatpush3.msra.mxu0 %v5870_v54  ;;  %5041 = vmatpush3.msra.mxu1 %v5870_v54 }
 0x12f   : > { %5007 = vmatprep.subr.mxu0 %v5879_v61  ;;  %5042 = vmatprep.subr.mxu1 %v5879_v61 }
 0x130   : > { %5008 = vmatpush3.msra.mxu0 %v5879_v61  ;;  %5043 = vmatpush3.msra.mxu1 %v5879_v61 }
 0x131   : > { %5009 = vmatprep.subr.mxu0 %v5888_v7  ;;  %5044 = vmatprep.subr.mxu1 %v5888_v7 }
 0x132   : > { %5010 = vmatpush3.msra.mxu0 %v5888_v7  ;;  %5045 = vmatpush3.msra.mxu1 %v5888_v7 }
 0x133   : > { %5011 = vmatprep.subr.mxu0 %v5896_v8  ;;  %5046 = vmatprep.subr.mxu1 %v5896_v8 }
 0x134   : > { %5012 = vmatpush3.msra.mxu0 %v5896_v8  ;;  %5047 = vmatpush3.msra.mxu1 %v5896_v8 }
 0x135   : > { %5013 = vmatprep.subr.mxu0 %v5905_v10  ;;  %5048 = vmatprep.subr.mxu1 %v5905_v10 }
 0x136   : > { %5014 = vmatpush3.msra.mxu0 %v5905_v10  ;;  %5049 = vmatpush3.msra.mxu1 %v5905_v10 }
 0x137   : > { %5015 = vmatprep.subr.mxu0 %v5916_v63  ;;  %5050 = vmatprep.subr.mxu1 %v5916_v63 }
 0x138   : > { %5016 = vmatpush3.msra.mxu0 %v5916_v63  ;;  %5051 = vmatpush3.msra.mxu1 %v5916_v63 }
 0x139   : > { %5017 = vmatprep.subr.mxu0 %v5925_v17  ;;  %5052 = vmatprep.subr.mxu1 %v5925_v17 }
 0x13a   : > { %5018 = vmatpush3.msra.mxu0 %v5925_v17  ;;  %5053 = vmatpush3.msra.mxu1 %v5925_v17 }
 0x13b   : > { %5019 = vmatprep.subr.mxu0 %v5933_v18  ;;  %5054 = vmatprep.subr.mxu1 %v5933_v18 }
 0x13c   : > { %5020 = vmatpush3.msra.mxu0 %v5933_v18  ;;  %5055 = vmatpush3.msra.mxu1 %v5933_v18 }
 0x13d   : > { %5021 = vmatprep.subr.mxu0 %v5940_v0  ;;  %5056 = vmatprep.subr.mxu1 %v5940_v0 }
 0x13e   : > { %5022 = vmatpush3.msra.mxu0 %v5940_v0  ;;  %5057 = vmatpush3.msra.mxu1 %v5940_v0 }
 0x13f   : > { %5023 = vmatprep.subr.mxu0 %v5948_v21  ;;  %5058 = vmatprep.subr.mxu1 %v5948_v21 }
 0x140   : > { %5024 = vmatpush3.msra.mxu0 %v5948_v21  ;;  %5059 = vmatpush3.msra.mxu1 %v5948_v21 }
 0x141   : > { %5025 = vmatprep.subr.mxu0 %v5954_v22  ;;  %5060 = vmatprep.subr.mxu1 %v5954_v22 }
 0x142   : > { %5026 = vmatpush3.msra.mxu0 %v5954_v22  ;;  %5061 = vmatpush3.msra.mxu1 %v5954_v22 }
 0x143   : > { %5028 = vmatmul.mubr.msk.f32.vlgmr.msra.gmra.mxu0 %vm657_vm5, %v5635_v62  ;;  %5063 = vmatmul.mubr.msk.f32.vlgmr.msra.gmra.mxu1 %vm740_vm6, %v5635_v62  ;;  %vm3475_vm6 = vcmask 130048  }
 0x144   : > { %5065 = vmatprep.subr.mxu0 %v5838_v39  ;;  %5100 = vmatprep.subr.mxu1 %v5838_v39 }
 0x145   : > { %5066 = vmatpush3.msra.mxu0 %v5838_v39  ;;  %5101 = vmatpush3.msra.mxu1 %v5838_v39 }
 0x146   : > { %5067 = vmatprep.subr.mxu0 %v5841_v42  ;;  %5102 = vmatprep.subr.mxu1 %v5841_v42 }
 0x147   : > { %5068 = vmatpush3.msra.mxu0 %v5841_v42  ;;  %5103 = vmatpush3.msra.mxu1 %v5841_v42 }
 0x148   : > { %5069 = vmatprep.subr.mxu0 %v5849_v46  ;;  %5104 = vmatprep.subr.mxu1 %v5849_v46 }
 0x149   : > { %5070 = vmatpush3.msra.mxu0 %v5849_v46  ;;  %5105 = vmatpush3.msra.mxu1 %v5849_v46 }
 0x14a   : > { %5071 = vmatprep.subr.mxu0 %v5856_v49  ;;  %5106 = vmatprep.subr.mxu1 %v5856_v49 }
 0x14b   : > { %5072 = vmatpush3.msra.mxu0 %v5856_v49  ;;  %5107 = vmatpush3.msra.mxu1 %v5856_v49 }
 0x14c   : > { %5073 = vmatprep.subr.mxu0 %v5862_v51  ;;  %5108 = vmatprep.subr.mxu1 %v5862_v51 }
 0x14d   : > { %5074 = vmatpush3.msra.mxu0 %v5862_v51  ;;  %5109 = vmatpush3.msra.mxu1 %v5862_v51 }
 0x14e   : > { %5075 = vmatprep.subr.mxu0 %v5870_v54  ;;  %5110 = vmatprep.subr.mxu1 %v5870_v54 }
 0x14f   : > { %5076 = vmatpush3.msra.mxu0 %v5870_v54  ;;  %5111 = vmatpush3.msra.mxu1 %v5870_v54 }
 0x150   : > { %5077 = vmatprep.subr.mxu0 %v5879_v61  ;;  %5112 = vmatprep.subr.mxu1 %v5879_v61 }
 0x151   : > { %5078 = vmatpush3.msra.mxu0 %v5879_v61  ;;  %5113 = vmatpush3.msra.mxu1 %v5879_v61 }
 0x152   : > { %5079 = vmatprep.subr.mxu0 %v5888_v7  ;;  %5114 = vmatprep.subr.mxu1 %v5888_v7 }
 0x153   : > { %5080 = vmatpush3.msra.mxu0 %v5888_v7  ;;  %5115 = vmatpush3.msra.mxu1 %v5888_v7 }
 0x154   : > { %5081 = vmatprep.subr.mxu0 %v5896_v8  ;;  %5116 = vmatprep.subr.mxu1 %v5896_v8 }
 0x155   : > { %5082 = vmatpush3.msra.mxu0 %v5896_v8  ;;  %5117 = vmatpush3.msra.mxu1 %v5896_v8 }
 0x156   : > { %5083 = vmatprep.subr.mxu0 %v5905_v10  ;;  %5118 = vmatprep.subr.mxu1 %v5905_v10 }
 0x157   : > { %5084 = vmatpush3.msra.mxu0 %v5905_v10  ;;  %5119 = vmatpush3.msra.mxu1 %v5905_v10 }
 0x158   : > { %5085 = vmatprep.subr.mxu0 %v5916_v63  ;;  %5120 = vmatprep.subr.mxu1 %v5916_v63 }
 0x159   : > { %5086 = vmatpush3.msra.mxu0 %v5916_v63  ;;  %5121 = vmatpush3.msra.mxu1 %v5916_v63 }
 0x15a   : > { %5087 = vmatprep.subr.mxu0 %v5925_v17  ;;  %5122 = vmatprep.subr.mxu1 %v5925_v17 }
 0x15b   : > { %5088 = vmatpush3.msra.mxu0 %v5925_v17  ;;  %5123 = vmatpush3.msra.mxu1 %v5925_v17 }
 0x15c   : > { %5089 = vmatprep.subr.mxu0 %v5933_v18  ;;  %5124 = vmatprep.subr.mxu1 %v5933_v18 }
 0x15d   : > { %5090 = vmatpush3.msra.mxu0 %v5933_v18  ;;  %5125 = vmatpush3.msra.mxu1 %v5933_v18 }
 0x15e   : > { %5091 = vmatprep.subr.mxu0 %v5940_v0  ;;  %5126 = vmatprep.subr.mxu1 %v5940_v0 }
 0x15f   : > { %5092 = vmatpush3.msra.mxu0 %v5940_v0  ;;  %5127 = vmatpush3.msra.mxu1 %v5940_v0 }
 0x160   : > { %5093 = vmatprep.subr.mxu0 %v5948_v21  ;;  %5128 = vmatprep.subr.mxu1 %v5948_v21 }
 0x161   : > { %5094 = vmatpush3.msra.mxu0 %v5948_v21  ;;  %5129 = vmatpush3.msra.mxu1 %v5948_v21 }
 0x162   : > { %5095 = vmatprep.subr.mxu0 %v5954_v22  ;;  %5130 = vmatprep.subr.mxu1 %v5954_v22 }
 0x163   : > { %5096 = vmatpush3.msra.mxu0 %v5954_v22  ;;  %5097 = vmatprep.mubr.msk.f32.mxu0 %vm824_vm7, %v5635_v62 }
 0x164   : > { %5131 = vmatpush3.msra.mxu1 %v5954_v22  ;;  %5098 = vmatmul.mubr.msk.f32.vlgmr.msra.gmra.mxu0 %vm825_vm8, %v5635_v62 }
 0x165   : > { %5132 = vmatprep.mubr.msk.f32.mxu1 %vm909_vm9, %v5635_v62  ;;  %5135 = vmatprep.subr.mxu0 %v5838_v39 }
 0x166   : > { %5170 = vmatprep.subr.mxu1 %v5838_v39  ;;  %5133 = vmatmul.mubr.msk.f32.vlgmr.msra.gmra.mxu1 %vm910_vm10, %v5635_v62 }
 0x167   : > { %5136 = vmatpush3.msra.mxu0 %v5838_v39  ;;  %5171 = vmatpush3.msra.mxu1 %v5838_v39 }
 0x168   : > { %5137 = vmatprep.subr.mxu0 %v5841_v42  ;;  %5172 = vmatprep.subr.mxu1 %v5841_v42 }
 0x169   : > { %5138 = vmatpush3.msra.mxu0 %v5841_v42  ;;  %5173 = vmatpush3.msra.mxu1 %v5841_v42 }
 0x16a   : > { %5139 = vmatprep.subr.mxu0 %v5849_v46  ;;  %5174 = vmatprep.subr.mxu1 %v5849_v46 }
 0x16b   : > { %5140 = vmatpush3.msra.mxu0 %v5849_v46  ;;  %5175 = vmatpush3.msra.mxu1 %v5849_v46 }
 0x16c   : > { %5141 = vmatprep.subr.mxu0 %v5856_v49  ;;  %5176 = vmatprep.subr.mxu1 %v5856_v49 }
 0x16d   : > { %5142 = vmatpush3.msra.mxu0 %v5856_v49  ;;  %5177 = vmatpush3.msra.mxu1 %v5856_v49 }
 0x16e   : > { %5143 = vmatprep.subr.mxu0 %v5862_v51  ;;  %5178 = vmatprep.subr.mxu1 %v5862_v51 }
 0x16f   : > { %5144 = vmatpush3.msra.mxu0 %v5862_v51  ;;  %5179 = vmatpush3.msra.mxu1 %v5862_v51 }
 0x170   : > { %5145 = vmatprep.subr.mxu0 %v5870_v54  ;;  %5180 = vmatprep.subr.mxu1 %v5870_v54 }
 0x171   : > { %5146 = vmatpush3.msra.mxu0 %v5870_v54  ;;  %5181 = vmatpush3.msra.mxu1 %v5870_v54 }
 0x172   : > { %5147 = vmatprep.subr.mxu0 %v5879_v61  ;;  %5182 = vmatprep.subr.mxu1 %v5879_v61 }
 0x173   : > { %5148 = vmatpush3.msra.mxu0 %v5879_v61  ;;  %5183 = vmatpush3.msra.mxu1 %v5879_v61 }
 0x174   : > { %5149 = vmatprep.subr.mxu0 %v5888_v7  ;;  %5184 = vmatprep.subr.mxu1 %v5888_v7 }
 0x175   : > { %5150 = vmatpush3.msra.mxu0 %v5888_v7  ;;  %5185 = vmatpush3.msra.mxu1 %v5888_v7 }
 0x176   : > { %5151 = vmatprep.subr.mxu0 %v5896_v8  ;;  %5186 = vmatprep.subr.mxu1 %v5896_v8 }
 0x177   : > { %5152 = vmatpush3.msra.mxu0 %v5896_v8  ;;  %5187 = vmatpush3.msra.mxu1 %v5896_v8 }
 0x178   : > { %5153 = vmatprep.subr.mxu0 %v5905_v10  ;;  %5188 = vmatprep.subr.mxu1 %v5905_v10 }
 0x179   : > { %5154 = vmatpush3.msra.mxu0 %v5905_v10  ;;  %5189 = vmatpush3.msra.mxu1 %v5905_v10 }
 0x17a   : > { %5155 = vmatprep.subr.mxu0 %v5916_v63  ;;  %5190 = vmatprep.subr.mxu1 %v5916_v63 }
 0x17b   : > { %5156 = vmatpush3.msra.mxu0 %v5916_v63  ;;  %5191 = vmatpush3.msra.mxu1 %v5916_v63 }
 0x17c   : > { %5157 = vmatprep.subr.mxu0 %v5925_v17  ;;  %5192 = vmatprep.subr.mxu1 %v5925_v17 }
 0x17d   : > { %5158 = vmatpush3.msra.mxu0 %v5925_v17  ;;  %5193 = vmatpush3.msra.mxu1 %v5925_v17 }
 0x17e   : > { %5159 = vmatprep.subr.mxu0 %v5933_v18  ;;  %5194 = vmatprep.subr.mxu1 %v5933_v18 }
 0x17f   : > { %5160 = vmatpush3.msra.mxu0 %v5933_v18  ;;  %5195 = vmatpush3.msra.mxu1 %v5933_v18 }
 0x180   : > { %5161 = vmatprep.subr.mxu0 %v5940_v0  ;;  %5196 = vmatprep.subr.mxu1 %v5940_v0 }
 0x181   : > { %5162 = vmatpush3.msra.mxu0 %v5940_v0  ;;  %5197 = vmatpush3.msra.mxu1 %v5940_v0 }
 0x182   : > { %5163 = vmatprep.subr.mxu0 %v5948_v21  ;;  %5198 = vmatprep.subr.mxu1 %v5948_v21 }
 0x183   : > { %5164 = vmatpush3.msra.mxu0 %v5948_v21  ;;  %5199 = vmatpush3.msra.mxu1 %v5948_v21 }
 0x184   : > { %5165 = vmatprep.subr.mxu0 %v5954_v22  ;;  %5200 = vmatprep.subr.mxu1 %v5954_v22 }
 0x185   : > { %5166 = vmatpush3.msra.mxu0 %v5954_v22  ;;  %5167 = vmatprep.mubr.msk.f32.mxu0 %vm994_vm11, %v5635_v62 }
 0x186   : > { %5201 = vmatpush3.msra.mxu1 %v5954_v22  ;;  %5168 = vmatmul.mubr.msk.f32.vlgmr.msra.gmra.mxu0 %vm995_vm12, %v5635_v62 }
 0x187   : > { %5202 = vmatprep.mubr.msk.f32.mxu1 %vm1079_vm13, %v5635_v62  ;;  %5205 = vmatprep.subr.mxu0 %v5838_v39 }
 0x188   : > { %5240 = vmatprep.subr.mxu1 %v5838_v39  ;;  %5203 = vmatmul.mubr.msk.f32.vlgmr.msra.gmra.mxu1 %vm1080_vm14, %v5635_v62 }
 0x189   : > { %5206 = vmatpush3.msra.mxu0 %v5838_v39  ;;  %5241 = vmatpush3.msra.mxu1 %v5838_v39  ;;  %v5377_v39 = vld [vmem:[%s6899_s3 + $0x30] sm:$0xff]  }
 0x18a   : > { %5207 = vmatprep.subr.mxu0 %v5841_v42  ;;  %5242 = vmatprep.subr.mxu1 %v5841_v42 }
 0x18b   : > { %5208 = vmatpush3.msra.mxu0 %v5841_v42  ;;  %5243 = vmatpush3.msra.mxu1 %v5841_v42  ;;  %v5380_v42 = vld [vmem:[%s6899_s3 + $0xe8] sm:$0xff]  }
 0x18c   : > { %5209 = vmatprep.subr.mxu0 %v5849_v46  ;;  %5244 = vmatprep.subr.mxu1 %v5849_v46 }
 0x18d   : > { %5210 = vmatpush3.msra.mxu0 %v5849_v46  ;;  %5245 = vmatpush3.msra.mxu1 %v5849_v46  ;;  %v5384_v46 = vld [vmem:[%s6899_s3 + $0xe0] sm:$0xff]  }
 0x18e   : > { %5211 = vmatprep.subr.mxu0 %v5856_v49  ;;  %5246 = vmatprep.subr.mxu1 %v5856_v49 }
 0x18f   : > { %5212 = vmatpush3.msra.mxu0 %v5856_v49  ;;  %5247 = vmatpush3.msra.mxu1 %v5856_v49  ;;  %v5388_v49 = vld [vmem:[%s6899_s3 + $0xd8] sm:$0xff]  }
 0x190   : > { %5213 = vmatprep.subr.mxu0 %v5862_v51  ;;  %5248 = vmatprep.subr.mxu1 %v5862_v51 }
 0x191   : > { %5214 = vmatpush3.msra.mxu0 %v5862_v51  ;;  %5249 = vmatpush3.msra.mxu1 %v5862_v51  ;;  %v5390_v51 = vld [vmem:[%s6899_s3 + $0x98] sm:$0xff]  }
 0x192   : > { %5215 = vmatprep.subr.mxu0 %v5870_v54  ;;  %5250 = vmatprep.subr.mxu1 %v5870_v54 }
 0x193   : > { %5216 = vmatpush3.msra.mxu0 %v5870_v54  ;;  %5251 = vmatpush3.msra.mxu1 %v5870_v54  ;;  %v5391_v54 = vld [vmem:[%s6899_s3 + $0x50] sm:$0xff]  }
 0x194   : > { %5217 = vmatprep.subr.mxu0 %v5879_v61  ;;  %5252 = vmatprep.subr.mxu1 %v5879_v61 }
 0x195   : > { %5218 = vmatpush3.msra.mxu0 %v5879_v61  ;;  %5253 = vmatpush3.msra.mxu1 %v5879_v61  ;;  %v5396_v61 = vld [vmem:[%s6899_s3 + $0xc8] sm:$0xff]  }
 0x196   : > { %5219 = vmatprep.subr.mxu0 %v5888_v7  ;;  %5254 = vmatprep.subr.mxu1 %v5888_v7 }
 0x197   : > { %5220 = vmatpush3.msra.mxu0 %v5888_v7  ;;  %5255 = vmatpush3.msra.mxu1 %v5888_v7  ;;  %v5398_v7 = vld [vmem:[%s6899_s3 + $0x88] sm:$0xff]  }
 0x198   : > { %5221 = vmatprep.subr.mxu0 %v5896_v8  ;;  %5256 = vmatprep.subr.mxu1 %v5896_v8 }
 0x199   : > { %5222 = vmatpush3.msra.mxu0 %v5896_v8  ;;  %5257 = vmatpush3.msra.mxu1 %v5896_v8  ;;  %v5400_v8 = vld [vmem:[%s6899_s3 + $0xc0] sm:$0xff]  }
 0x19a   : > { %5223 = vmatprep.subr.mxu0 %v5905_v10  ;;  %5258 = vmatprep.subr.mxu1 %v5905_v10 }
 0x19b   : > { %5224 = vmatpush3.msra.mxu0 %v5905_v10  ;;  %5259 = vmatpush3.msra.mxu1 %v5905_v10  ;;  %v5404_v10 = vld [vmem:[%s6899_s3 + $0x1f8] sm:$0xff]  }
 0x19c   : > { %5225 = vmatprep.subr.mxu0 %v5916_v63  ;;  %5260 = vmatprep.subr.mxu1 %v5916_v63 }
 0x19d   : > { %5226 = vmatpush3.msra.mxu0 %v5916_v63  ;;  %5261 = vmatpush3.msra.mxu1 %v5916_v63 }
 0x19e   : > { %5227 = vmatprep.subr.mxu0 %v5925_v17  ;;  %5262 = vmatprep.subr.mxu1 %v5925_v17 }
 0x19f   : > { %5228 = vmatpush3.msra.mxu0 %v5925_v17  ;;  %5263 = vmatpush3.msra.mxu1 %v5925_v17 }
 0x1a0   : > { %5229 = vmatprep.subr.mxu0 %v5933_v18  ;;  %5264 = vmatprep.subr.mxu1 %v5933_v18 }
 0x1a1   : > { %5230 = vmatpush3.msra.mxu0 %v5933_v18  ;;  %5265 = vmatpush3.msra.mxu1 %v5933_v18 }
 0x1a2   : > { %5231 = vmatprep.subr.mxu0 %v5940_v0  ;;  %5266 = vmatprep.subr.mxu1 %v5940_v0 }
 0x1a3   : > { %5232 = vmatpush3.msra.mxu0 %v5940_v0  ;;  %5267 = vmatpush3.msra.mxu1 %v5940_v0 }
 0x1a4   : > { %5233 = vmatprep.subr.mxu0 %v5948_v21  ;;  %5268 = vmatprep.subr.mxu1 %v5948_v21 }
 0x1a5   : > { %5234 = vmatpush3.msra.mxu0 %v5948_v21  ;;  %5269 = vmatpush3.msra.mxu1 %v5948_v21 }
 0x1a6   : > { %5235 = vmatprep.subr.mxu0 %v5954_v22  ;;  %5270 = vmatprep.subr.mxu1 %v5954_v22 }
 0x1a7   : > { %5236 = vmatpush3.msra.mxu0 %v5954_v22  ;;  %5237 = vmatprep.mubr.msk.f32.mxu0 %vm1164_vm15, %v5635_v62 }
 0x1a8   : > { %5271 = vmatpush3.msra.mxu1 %v5954_v22  ;;  %5272 = vmatprep.mubr.msk.f32.mxu1 %vm1249_vm0, %v5635_v62 }
 0x1a9   : > { %5238 = vmatmul.mubr.msk.f32.vlgmr.msra.gmra.mxu0 %vm1165_vm1, %v5635_v62  ;;  %5273 = vmatmul.mubr.msk.f32.vlgmr.msra.gmra.mxu1 %vm1250_vm2, %v5635_v62  ;;  %v5375_v62 = vld [vmem:[%s6899_s3 + $0x70] sm:$0xff]  }
 0x1aa   : > { %4670 = vmatprep.subr.bf16.mxu0 %v5371_v59  ;;  %4692 = vmatprep.subr.bf16.mxu1 %v5372_v35 }
 0x1ab   : > { %4671 = vmatpush3.bf16.msra.mxu0 %v5373_v36  ;;  %4693 = vmatpush3.bf16.msra.mxu1 %v5374_v37 }
 0x1ac   : > { %4672 = vmatprep.subr.bf16.mxu0 %v5375_v62  ;;  %4694 = vmatprep.subr.bf16.mxu1 %v5376_v38  ;;  %v5405_v62 = vld [vmem:[%s6899_s3 + $0x138] sm:$0xff]  }
 0x1ad   : > { %v5406_v38 = vld [vmem:[%s6899_s3 + $0x1b8] sm:$0xff]  }
 0x1af   : > { %4673 = vmatpush3.bf16.msra.mxu0 %v5377_v39  ;;  %4695 = vmatpush3.bf16.msra.mxu1 %v5378_v40 }
 0x1b0   : > { %4674 = vmatprep.subr.bf16.mxu0 %v5379_v41  ;;  %4696 = vmatprep.subr.bf16.mxu1 %v5380_v42 }
 0x1b3   : > { %4675 = vmatpush3.bf16.msra.mxu0 %v5381_v43  ;;  %4697 = vmatpush3.bf16.msra.mxu1 %v5382_v44 }
 0x1b4   : > { %4676 = vmatprep.subr.bf16.mxu0 %v5383_v45  ;;  %4698 = vmatprep.subr.bf16.mxu1 %v5384_v46 }
 0x1b7   : > { %4677 = vmatpush3.bf16.msra.mxu0 %v5385_v47  ;;  %4699 = vmatpush3.bf16.msra.mxu1 %v5386_v48 }
 0x1b8   : > { %4700 = vmatprep.subr.bf16.mxu1 %v5388_v49  ;;  %4678 = vmatprep.subr.bf16.mxu0 %v5387_v50 }
 0x1bb   : > { %4701 = vmatpush3.bf16.msra.mxu1 %v5390_v51  ;;  %4679 = vmatpush3.bf16.msra.mxu0 %v5389_v52 }
 0x1bc   : > { %4702 = vmatprep.subr.bf16.mxu1 %v5392_v53  ;;  %4680 = vmatprep.subr.bf16.mxu0 %v5391_v54  ;;  %v5407_v53 = vld [vmem:[%s6899_s3 + $0x170] sm:$0xff]  }
 0x1bd   : > { %v5408_v54 = vld [vmem:[%s6899_s3 + $0x1f0] sm:$0xff]  }
 0x1bf   : > { %4703 = vmatpush3.bf16.msra.mxu1 %v5394_v55  ;;  %4681 = vmatpush3.bf16.msra.mxu0 %v5393_v56  ;;  %v5409_v56 = vld [vmem:[%s6899_s3 + $0x130] sm:$0xff]  }
 0x1c0   : > { %4704 = vmatprep.subr.bf16.mxu1 %v5396_v61  ;;  %4682 = vmatprep.subr.bf16.mxu0 %v5395_v3  ;;  %v5411_v61 = vld [vmem:[%s6899_s3 + $0x168] sm:$0xff]  }
 0x1c1   : > { %v5412_v3 = vld [vmem:[%s6899_s3 + $0x1e8] sm:$0xff]  }
 0x1c3   : > { %4705 = vmatpush3.bf16.msra.mxu1 %v5398_v7  ;;  %4683 = vmatpush3.bf16.msra.mxu0 %v5397_v5  ;;  %v5413_v5 = vld [vmem:[%s6899_s3 + $0x128] sm:$0xff]  }
 0x1c4   : > { %4706 = vmatprep.subr.bf16.mxu1 %v5400_v8  ;;  %4684 = vmatprep.subr.bf16.mxu0 %v5399_v6  ;;  %v5414_v7 = vld [vmem:[%s6899_s3 + $0x1a8] sm:$0xff]   ;;  %v5415_v6 = vld [vmem:[%s6899_s3 + $0x160] sm:$0xff]  }
 0x1c5   : > { %v5416_v8 = vld [vmem:[%s6899_s3 + $0x1e0] sm:$0xff]  }
 0x1c7   : > { %4707 = vmatpush3.bf16.msra.mxu1 %v5402_v9  ;;  %4685 = vmatpush3.bf16.msra.mxu0 %v5401_v4  ;;  %v5417_v9 = vld [vmem:[%s6899_s3 + $0x120] sm:$0xff]  }
 0x1c8   : > { %4736 = vmatprep.subr.bf16.mxu1 %v5404_v10  ;;  %4714 = vmatprep.subr.bf16.mxu0 %v5403_v11  ;;  %v5418_v4 = vld [vmem:[%s6899_s3 + $0x1a0] sm:$0xff]   ;;  %v5419_v10 = vld [vmem:[%s6899_s3 + $0x158] sm:$0xff]  }
 0x1c9   : > { %v5420_v11 = vld [vmem:[%s6899_s3 + $0x1d8] sm:$0xff]  }
 0x203   : > { %v5029_v1 = vpop.f32.mrf.mxu0  ;;  %v5064_v12 = vpop.f32.mrf.mxu1 }
 0x204   : > { %v821_v15 = vmax.f32 %v5029_v1, %v5064_v12  ;;  %v5421_v1 = vld [vmem:[%s6899_s3 + $0x118] sm:$0xff]  }
 0x205   : > { %v728_v13 = vpop.f32.mrf.mxu0  ;;  %v811_v14 = vpop.f32.mrf.mxu1  ;;  %v5422_v12 = vld [vmem:[%s6899_s3 + $0x198] sm:$0xff]  }
 0x206   : > { %v820_v18 = vmax.f32 %v728_v13, %v811_v14  ;;  %v5423_v13 = vld [vmem:[%s6899_s3 + $0x150] sm:$0xff]  }
 0x207   : > { %v5425_v14 = vld [vmem:[%s6899_s3 + $0x110] sm:$0xff]  }
 0x224   : > { %v5099_v63 = vpop.f32.mrf.mxu0 }
 0x225   : > { %v906_v19 = vmax.f32 %v821_v15, %v5099_v63  ;;  %v5424_v63 = vld [vmem:[%s6899_s3 + $0x1d0] sm:$0xff]  }
 0x226   : > { %v5134_v17 = vpop.f32.mrf.mxu1  ;;  %v896_v2 = vpop.f32.mrf.mxu0  ;;  %v5426_v15 = vld [vmem:[%s6899_s3 + $0x190] sm:$0xff]  }
 0x227   : > { %v905_v16 = vmax.f32 %v820_v18, %v896_v2  ;;  %v991_v21 = vmax.f32 %v906_v19, %v5134_v17  ;;  %v5427_v17 = vld [vmem:[%s6899_s3 + $0x148] sm:$0xff]  }
 0x228   : > { %v981_v20 = vpop.f32.mrf.mxu1  ;;  %v5428_v2 = vld [vmem:[%s6899_s3 + $0x1c8] sm:$0xff]  }
 0x229   : > { %v990_v24 = vmax.f32 %v905_v16, %v981_v20  ;;  %v5429_v18 = vld [vmem:[%s6899_s3 + $0x108] sm:$0xff]   ;;  %v5432_v16 = vld [vmem:[%s6899_s3 + $0x1c0] sm:$0xff]  }
 0x22a   : > { %v5430_v19 = vld [vmem:[%s6899_s3 + $0x188] sm:$0xff]   ;;  %v5433_v20 = vld [vmem:[%s6899_s3 + $0x100] sm:$0xff]  }
 0x246   : > { %v5169_v0 = vpop.f32.mrf.mxu0 }
 0x247   : > { %v1076_v25 = vmax.f32 %v991_v21, %v5169_v0  ;;  %v5431_v0 = vld [vmem:[%s6899_s3 + $0x140] sm:$0xff]  }
 0x248   : > { %v5204_v22 = vpop.f32.mrf.mxu1  ;;  %v1066_v23 = vpop.f32.mrf.mxu0  ;;  %v5434_v21 = vld [vmem:[%s6899_s3 + $0x180] sm:$0xff]  }
 0x249   : > { %v1075_v26 = vmax.f32 %v990_v24, %v1066_v23  ;;  %v1161_v28 = vmax.f32 %v1076_v25, %v5204_v22 }
 0x24a   : > { %v1151_v27 = vpop.f32.mrf.mxu1 }
 0x24b   : > { %v1160_v31 = vmax.f32 %v1075_v26, %v1151_v27 }
 0x269   : > { %v5239_v29 = vpop.f32.mrf.mxu0  ;;  %v5274_v30 = vpop.f32.mrf.mxu1 }
 0x26a   : > { %v1246_v32 = vmax.f32 %v1161_v28, %v5239_v29  ;;  %v5435_v28 = vld [vmem:[%s6899_s3 + $0x278] sm:$0xff]  }
 0x26b   : > { %v1236_v33 = vpop.f32.mrf.mxu0  ;;  %v1321_v35 = vpop.f32.mrf.mxu1  ;;  %v5436_v29 = vld [vmem:[%s6899_s3 + $0x2f8] sm:$0xff]  }
 0x26c   : > { %v1331_v34 = vmax.f32 %v1246_v32, %v5274_v30  ;;  %v1245_v59 = vmax.f32 %v1160_v31, %v1236_v33  ;;  %v5437_v30 = vld [vmem:[%s6899_s3 + $0x238] sm:$0xff]   ;;  %v5439_v32 = vld [vmem:[%s6899_s3 + $0x270] sm:$0xff]  }
 0x26d   : > { %v5438_v31 = vld [vmem:[%s6899_s3 + $0x2b8] sm:$0xff]   ;;  %v5440_v33 = vld [vmem:[%s6899_s3 + $0x2f0] sm:$0xff]  }
 0x26e   : > { %1335 = vst [vmem:[#allocation2 + $0x10] sm:$0xff] %v1331_v34  ;;  %v1330_v36 = vmax.f32 %v1245_v59, %v1321_v35  ;;  %v5442_v59 = vld [vmem:[%s6899_s3 + $0x2b0] sm:$0xff]   ;;  %v5443_v35 = vld [vmem:[%s6899_s3 + $0x268] sm:$0xff]  }
 0x270   : > { %1334 = vst [vmem:[#allocation2 + $0x8] sm:$0xff] %v1330_v36  ;;  %v1355_v37 = vpack.c.bf16 %v1331_v34, %v1330_v36  ;;  %v5441_v34 = vld [vmem:[%s6899_s3 + $0x230] sm:$0xff]   ;;  %v5444_v36 = vld [vmem:[%s6899_s3 + $0x2e8] sm:$0xff]  }
 0x272   : > { %1952 = vmatprep.mubr.bf16.mxu1 %v1355_v37  ;;  %v5446_v37 = vld [vmem:[%s6899_s3 + $0x2a8] sm:$0xff]  }
 0x275   : > { %v1351_v50 = vld [vmem:[#allocation2 + $0x14] sm:$0xff] }
 0x276   : > { %v1347_v51 = vld [vmem:[#allocation2 + $0x12] sm:$0xff] }
 0x277   : > { %v1338_v39 = vld [vmem:[#allocation2 + $0x6] sm:$0xff]  ;;  %v1339_v40 = vld [vmem:[#allocation2 + $0xe] sm:$0xff] }
 0x278   : > { %v1336_v41 = vld [vmem:[#allocation2 + $0x5] sm:$0xff]  ;;  %v1353_v42 = vpack.c.bf16 %v1339_v40, %v1338_v39  ;;  %v1337_v43 = vld [vmem:[#allocation2 + $0xd] sm:$0xff] }
 0x279   : > { %v1340_v44 = vld [vmem:[#allocation2 + $0x7] sm:$0xff]  ;;  %v1341_v45 = vld [vmem:[#allocation2 + $0xf] sm:$0xff]  ;;  %v1352_v46 = vpack.c.bf16 %v1337_v43, %v1336_v41  ;;  %v5451_v43 = vld [vmem:[%s6899_s3 + $0x258] sm:$0xff]  }
 0x27a   : > { %v1354_v47 = vpack.c.bf16 %v1341_v45, %v1340_v44  ;;  %v1346_v48 = vld [vmem:[#allocation2 + $0xa] sm:$0xff]  ;;  %1911 = vmatprep.mubr.bf16.mxu0 %v1353_v42  ;;  %v1349_v25 = vld [vmem:[#allocation2 + $0x13] sm:$0xff]  ;;  %v5447_v39 = vld [vmem:[%s6899_s3 + $0x260] sm:$0xff]  }
 0x27b   : > { %v1350_v49 = vld [vmem:[#allocation2 + $0xc] sm:$0xff]  ;;  %1912 = vmatmul.mubr.bf16.vlgmr.msra.gmra.mxu0 %v1352_v46  ;;  %v1357_v55 = vpack.c.bf16 %v1347_v51, %v1346_v48  ;;  %v5450_v40 = vld [vmem:[%s6899_s3 + $0x2a0] sm:$0xff]   ;;  %v5452_v42 = vld [vmem:[%s6899_s3 + $0x2d8] sm:$0xff]  }
 0x27c   : > { %v1359_v52 = vpack.c.bf16 %v1351_v50, %v1350_v49  ;;  %1953 = vmatmul.mubr.bf16.vlgmr.msra.gmra.mxu1 %v1354_v47  ;;  %4715 = vmatpush3.bf16.msra.mxu0 %v5405_v62  ;;  %v1344_v22 = vld [vmem:[#allocation2 + $0x9] sm:$0xff]  ;;  %v1345_v24 = vld [vmem:[#allocation2 + $0x11] sm:$0xff]  ;;  %v5449_v41 = vld [vmem:[%s6899_s3 + $0x220] sm:$0xff]  }
 0x27d   : > { %4737 = vmatpush3.bf16.msra.mxu1 %v5406_v38  ;;  %1993 = vmatprep.mubr.bf16.mxu0 %v1357_v55  ;;  %v1348_v23 = vld [vmem:[#allocation2 + $0xb] sm:$0xff]  ;;  %v1356_v26 = vpack.c.bf16 %v1345_v24, %v1344_v22  ;;  %v5448_v38 = vld [vmem:[%s6899_s3 + $0x2e0] sm:$0xff]   ;;  %v5454_v44 = vld [vmem:[%s6899_s3 + $0x298] sm:$0xff]  }
 0x27e   : > { %2034 = vmatprep.mubr.bf16.mxu1 %v1359_v52  ;;  %4716 = vmatprep.subr.bf16.mxu0 %v5407_v53  ;;  %v1358_v27 = vpack.c.bf16 %v1349_v25, %v1348_v23  ;;  %v5445_v62 = vld [vmem:[%s6899_s3 + $0x228] sm:$0xff]   ;;  %v5453_v45 = vld [vmem:[%s6899_s3 + $0x218] sm:$0xff]   ;;  %v5456_v46 = vld [vmem:[%s6899_s3 + $0x2d0] sm:$0xff]  }
 0x27f   : > { %4738 = vmatprep.subr.bf16.mxu1 %v5408_v54  ;;  %v5455_v47 = vld [vmem:[%s6899_s3 + $0x250] sm:$0xff]   ;;  %v5459_v50 = vld [vmem:[%s6899_s3 + $0x248] sm:$0xff]   ;;  %v5464_v54 = vld [vmem:[%s6899_s3 + $0x2c0] sm:$0xff]  }
 0x280   : > { %4717 = vmatpush3.bf16.msra.mxu0 %v5409_v56  ;;  %v5458_v48 = vld [vmem:[%s6899_s3 + $0x290] sm:$0xff]   ;;  %v5460_v51 = vld [vmem:[%s6899_s3 + $0x2c8] sm:$0xff]   ;;  %v5463_v55 = vld [vmem:[%s6899_s3 + $0x240] sm:$0xff]  }
 0x281   : > { %4739 = vmatpush3.bf16.msra.mxu1 %v5410_v57  ;;  %4718 = vmatprep.subr.bf16.mxu0 %v5411_v61  ;;  %v5457_v49 = vld [vmem:[%s6899_s3 + $0x210] sm:$0xff]   ;;  %v5461_v52 = vld [vmem:[%s6899_s3 + $0x208] sm:$0xff]   ;;  %v5466_v56 = vld [vmem:[%s6899_s3 + $0x280] sm:$0xff]  }
 0x282   : > { %4740 = vmatprep.subr.bf16.mxu1 %v5412_v3  ;;  %v5462_v53 = vld [vmem:[%s6899_s3 + $0x288] sm:$0xff]   ;;  %v5465_v57 = vld [vmem:[%s6899_s3 + $0x200] sm:$0xff]   ;;  %v5468_v61 = vld [vmem:[%s6899_s3 + $0x3f8] sm:$0xff]  }
 0x283   : > { %v5467_v3 = vld [vmem:[%s6899_s3 + $0x378] sm:$0xff]  }
 0x284   : > { %4719 = vmatpush3.bf16.msra.mxu0 %v5413_v5 }
 0x285   : > { %4741 = vmatpush3.bf16.msra.mxu1 %v5414_v7  ;;  %4720 = vmatprep.subr.bf16.mxu0 %v5415_v6 }
 0x286   : > { %4742 = vmatprep.subr.bf16.mxu1 %v5416_v8 }
 0x288   : > { %4721 = vmatpush3.bf16.msra.mxu0 %v5417_v9 }
 0x289   : > { %4743 = vmatpush3.bf16.msra.mxu1 %v5418_v4  ;;  %4722 = vmatprep.subr.bf16.mxu0 %v5419_v10 }
 0x28a   : > { %4744 = vmatprep.subr.bf16.mxu1 %v5420_v11  ;;  %v4032_v11 = vld [vmem:[%s6900_s4] ss:$0 sm:$0xff] }
 0x28c   : > { %4723 = vmatpush3.bf16.msra.mxu0 %v5421_v1 }
 0x28d   : > { %4745 = vmatpush3.bf16.msra.mxu1 %v5422_v12  ;;  %4724 = vmatprep.subr.bf16.mxu0 %v5423_v13 }
 0x28e   : > { %4746 = vmatprep.subr.bf16.mxu1 %v5424_v63 }
 0x290   : > { %4725 = vmatpush3.bf16.msra.mxu0 %v5425_v14 }
 0x291   : > { %4747 = vmatpush3.bf16.msra.mxu1 %v5426_v15  ;;  %4726 = vmatprep.subr.bf16.mxu0 %v5427_v17 }
 0x292   : > { %4748 = vmatprep.subr.bf16.mxu1 %v5428_v2 }
 0x294   : > { %4727 = vmatpush3.bf16.msra.mxu0 %v5429_v18 }
 0x295   : > { %4749 = vmatpush3.bf16.msra.mxu1 %v5430_v19  ;;  %4728 = vmatprep.subr.bf16.mxu0 %v5431_v0 }
 0x296   : > { %4750 = vmatprep.subr.bf16.mxu1 %v5432_v16 }
 0x298   : > { %4729 = vmatpush3.bf16.msra.mxu0 %v5433_v20 }
 0x299   : > { %4751 = vmatpush3.bf16.msra.mxu1 %v5434_v21  ;;  %4758 = vmatprep.subr.bf16.mxu0 %v5435_v28 }
 0x29a   : > { %4780 = vmatprep.subr.bf16.mxu1 %v5436_v29 }
 0x29b   : > { %1994 = vmatmul.mubr.bf16.vlgmr.msra.gmra.mxu0 %v1356_v26 }
 0x29c   : > { %2035 = vmatmul.mubr.bf16.vlgmr.msra.gmra.mxu1 %v1358_v27  ;;  %4759 = vmatpush3.bf16.msra.mxu0 %v5437_v30 }
 0x29d   : > { %4781 = vmatpush3.bf16.msra.mxu1 %v5438_v31  ;;  %4760 = vmatprep.subr.bf16.mxu0 %v5439_v32 }
 0x29e   : > { %4782 = vmatprep.subr.bf16.mxu1 %v5440_v33 }
 0x2a0   : > { %4761 = vmatpush3.bf16.msra.mxu0 %v5441_v34 }
 0x2a1   : > { %4783 = vmatpush3.bf16.msra.mxu1 %v5442_v59  ;;  %4762 = vmatprep.subr.bf16.mxu0 %v5443_v35  ;;  %v5470_v35 = vld [vmem:[%s6899_s3 + $0x3b8] sm:$0xff]  }
 0x2a2   : > { %4784 = vmatprep.subr.bf16.mxu1 %v5444_v36 }
 0x2a4   : > { %4763 = vmatpush3.bf16.msra.mxu0 %v5445_v62 }
 0x2a5   : > { %4785 = vmatpush3.bf16.msra.mxu1 %v5446_v37  ;;  %4764 = vmatprep.subr.bf16.mxu0 %v5447_v39 }
 0x2a6   : > { %4786 = vmatprep.subr.bf16.mxu1 %v5448_v38  ;;  %v5469_v38 = vld [vmem:[%s6899_s3 + $0x338] sm:$0xff]  }
 0x2a8   : > { %4765 = vmatpush3.bf16.msra.mxu0 %v5449_v41 }
 0x2a9   : > { %4787 = vmatpush3.bf16.msra.mxu1 %v5450_v40  ;;  %4766 = vmatprep.subr.bf16.mxu0 %v5451_v43 }
 0x2aa   : > { %4788 = vmatprep.subr.bf16.mxu1 %v5452_v42 }
 0x2ac   : > { %4767 = vmatpush3.bf16.msra.mxu0 %v5453_v45 }
 0x2ad   : > { %4789 = vmatpush3.bf16.msra.mxu1 %v5454_v44  ;;  %4768 = vmatprep.subr.bf16.mxu0 %v5455_v47 }
 0x2ae   : > { %4790 = vmatprep.subr.bf16.mxu1 %v5456_v46 }
 0x2b0   : > { %4769 = vmatpush3.bf16.msra.mxu0 %v5457_v49  ;;  %v5471_v49 = vld [vmem:[%s6899_s3 + $0x370] sm:$0xff]  }
 0x2b1   : > { %4791 = vmatpush3.bf16.msra.mxu1 %v5458_v48  ;;  %4770 = vmatprep.subr.bf16.mxu0 %v5459_v50 }
 0x2b2   : > { %4792 = vmatprep.subr.bf16.mxu1 %v5460_v51 }
 0x2b4   : > { %4771 = vmatpush3.bf16.msra.mxu0 %v5461_v52  ;;  %v5472_v52 = vld [vmem:[%s6899_s3 + $0x3f0] sm:$0xff]  }
 0x2b5   : > { %4793 = vmatpush3.bf16.msra.mxu1 %v5462_v53  ;;  %4772 = vmatprep.subr.bf16.mxu0 %v5463_v55  ;;  %v5474_v53 = vld [vmem:[%s6899_s3 + $0x3b0] sm:$0xff]   ;;  %v5476_v55 = vld [vmem:[%s6899_s3 + $0x3e8] sm:$0xff]  }
 0x2b6   : > { %4794 = vmatprep.subr.bf16.mxu1 %v5464_v54  ;;  %v5473_v54 = vld [vmem:[%s6899_s3 + $0x330] sm:$0xff]  }
 0x2b8   : > { %4773 = vmatpush3.bf16.msra.mxu0 %v5465_v57  ;;  %v5478_v57 = vld [vmem:[%s6899_s3 + $0x3a8] sm:$0xff]  }
 0x2b9   : > { %4795 = vmatpush3.bf16.msra.mxu1 %v5466_v56  ;;  %4802 = vmatprep.subr.bf16.mxu0 %v5467_v3  ;;  %v5475_v56 = vld [vmem:[%s6899_s3 + $0x368] sm:$0xff]   ;;  %v5480_v3 = vld [vmem:[%s6899_s3 + $0x3e0] sm:$0xff]  }
 0x2ba   : > { %4824 = vmatprep.subr.bf16.mxu1 %v5468_v61  ;;  %v5477_v61 = vld [vmem:[%s6899_s3 + $0x328] sm:$0xff]  }
 0x33b   : > { %v4686_v5 = vpop.f32.mrf.mxu0 }
 0x33c   : > { %v4708_v7 = vpop.f32.mrf.mxu1 }
 0x33d   : > { %v4687_v6 = vpop.f32.mrf.mxu0 }
 0x33e   : > { %v4709_v8 = vpop.f32.mrf.mxu1  ;;  %v4688_v10 = vadd.f32 %v4687_v6, %v4686_v5  ;;  %v5479_v5 = vld [vmem:[%s6899_s3 + $0x360] sm:$0xff]  }
 0x33f   : > { %v4689_v9 = vpop.f32.mrf.mxu0  ;;  %v4710_v17 = vadd.f32 %v4709_v8, %v4708_v7  ;;  %v5482_v7 = vld [vmem:[%s6899_s3 + $0x3a0] sm:$0xff]   ;;  %v5484_v8 = vld [vmem:[%s6899_s3 + $0x3d8] sm:$0xff]  }
 0x340   : > { %v4711_v4 = vpop.f32.mrf.mxu1  ;;  %v1914_v13 = vadd.f32 %v4688_v10, %v4032_v11  ;;  %v5481_v6 = vld [vmem:[%s6899_s3 + $0x320] sm:$0xff]   ;;  %v5485_v10 = vld [vmem:[%s6899_s3 + $0x318] sm:$0xff]  }
 0x341   : > { %v4690_v1 = vpop.f32.mrf.mxu0 }
 0x342   : > { %v4712_v12 = vpop.f32.mrf.mxu1  ;;  %v4691_v63 = vadd.f32 %v4690_v1, %v4689_v9  ;;  %v1955_v19 = vadd.f32 %v4710_v17, %v1914_v13  ;;  %v5483_v9 = vld [vmem:[%s6899_s3 + $0x358] sm:$0xff]   ;;  %v5487_v1 = vld [vmem:[%s6899_s3 + $0x350] sm:$0xff]   ;;  %v5493_v17 = vld [vmem:[%s6899_s3 + $0x308] sm:$0xff]  }
 0x343   : > { %v4713_v22 = vadd.f32 %v4712_v12, %v4711_v4  ;;  %v5486_v4 = vld [vmem:[%s6899_s3 + $0x398] sm:$0xff]   ;;  %v5490_v12 = vld [vmem:[%s6899_s3 + $0x390] sm:$0xff]  }
 0x344   : > { %v1917_v0 = vadd.f32 %v4691_v63, %v4032_v11  ;;  %v5488_v11 = vld [vmem:[%s6899_s3 + $0x3d0] sm:$0xff]   ;;  %v5492_v63 = vld [vmem:[%s6899_s3 + $0x3c8] sm:$0xff]  }
 0x345   : > { %v5489_v13 = vld [vmem:[%s6899_s3 + $0x310] sm:$0xff]  }
 0x346   : > { %v1958_v27 = vadd.f32 %v4713_v22, %v1917_v0  ;;  %v5497_v0 = vld [vmem:[%s6899_s3 + $0x300] sm:$0xff]  }
 0x35b   : > { %v4730_v14 = vpop.f32.mrf.mxu0 }
 0x35c   : > { %v4752_v15 = vpop.f32.mrf.mxu1 }
 0x35d   : > { %v4731_v2 = vpop.f32.mrf.mxu0 }
 0x35e   : > { %v4753_v18 = vpop.f32.mrf.mxu1  ;;  %v4732_v16 = vadd.f32 %v4731_v2, %v4730_v14  ;;  %v5491_v14 = vld [vmem:[%s6899_s3 + $0x348] sm:$0xff]   ;;  %v5496_v2 = vld [vmem:[%s6899_s3 + $0x3c0] sm:$0xff]  }
 0x35f   : > { %v4733_v20 = vpop.f32.mrf.mxu0  ;;  %v4754_v24 = vadd.f32 %v4753_v18, %v4752_v15  ;;  %v5494_v15 = vld [vmem:[%s6899_s3 + $0x388] sm:$0xff]   ;;  %v5495_v18 = vld [vmem:[%s6899_s3 + $0x340] sm:$0xff]  }
 0x360   : > { %v4755_v21 = vpop.f32.mrf.mxu1  ;;  %v1996_v23 = vadd.f32 %v4732_v16, %v1955_v19  ;;  %v5498_v19 = vld [vmem:[%s6899_s3 + $0x380] sm:$0xff]  }
 0x361   : > { %v4734_v25 = vpop.f32.mrf.mxu0 }
 0x362   : > { %v4756_v26 = vpop.f32.mrf.mxu1  ;;  %v2037_v28 = vadd.f32 %v4754_v24, %v1996_v23  ;;  %v4735_v29 = vadd.f32 %v4734_v25, %v4733_v20  ;;  %v5499_v25 = vld [vmem:[%s6899_s3 + $0x478] sm:$0xff]  }
 0x363   : > { %v4757_v32 = vadd.f32 %v4756_v26, %v4755_v21  ;;  %v5500_v26 = vld [vmem:[%s6899_s3 + $0x4f8] sm:$0xff]  }
 0x364   : > { %v2043_v30 = vmax.f32 %v2037_v28, 0.0  ;;  %v1999_v31 = vadd.f32 %v4735_v29, %v1958_v27  ;;  %v5501_v27 = vld [vmem:[%s6899_s3 + $0x438] sm:$0xff]   ;;  %v5503_v29 = vld [vmem:[%s6899_s3 + $0x470] sm:$0xff]  }
 0x365   : > { %v5502_v28 = vld [vmem:[%s6899_s3 + $0x4b8] sm:$0xff]  }
 0x366   : > { %2045 = vst [vmem:[#allocation2 + $0x8] sm:$0xff] %v2043_v30  ;;  %v2040_v33 = vadd.f32 %v4757_v32, %v1999_v31  ;;  %v5505_v31 = vld [vmem:[%s6899_s3 + $0x430] sm:$0xff]  }
 0x367   : > { %v5506_v32 = vld [vmem:[%s6899_s3 + $0x4b0] sm:$0xff]  }
 0x368   : > { %v2044_v34 = vmax.f32 %v2040_v33, 0.0  ;;  %v5507_v33 = vld [vmem:[%s6899_s3 + $0x468] sm:$0xff]  }
 0x36a   : > { %2046 = vst [vmem:[#allocation2 + $0x10] sm:$0xff] %v2044_v34  ;;  %v2066_v59 = vpack.c.bf16 %v2044_v34, %v2043_v30  ;;  %v5504_v30 = vld [vmem:[%s6899_s3 + $0x4f0] sm:$0xff]   ;;  %v5508_v34 = vld [vmem:[%s6899_s3 + $0x4e8] sm:$0xff]  }
 0x36c   : > { %2665 = vmatprep.mubr.bf16.mxu1 %v2066_v59  ;;  %v5510_v59 = vld [vmem:[%s6899_s3 + $0x4a8] sm:$0xff]  }
 0x36d   : > { %v2049_v36 = vld [vmem:[#allocation2 + $0x6] sm:$0xff] }
 0x36e   : > { %v2047_v37 = vld [vmem:[#allocation2 + $0x5] sm:$0xff] }
 0x36f   : > { %v2051_v62 = vld [vmem:[#allocation2 + $0x7] sm:$0xff] }
 0x371   : > { %v2050_v39 = vld [vmem:[#allocation2 + $0xe] sm:$0xff] }
 0x372   : > { %v2048_v40 = vld [vmem:[#allocation2 + $0xd] sm:$0xff]  ;;  %v2064_v42 = vpack.c.bf16 %v2050_v39, %v2049_v36  ;;  %v5512_v36 = vld [vmem:[%s6899_s3 + $0x4e0] sm:$0xff]   ;;  %v5516_v39 = vld [vmem:[%s6899_s3 + $0x4d8] sm:$0xff]  }
 0x373   : > { %v2052_v41 = vld [vmem:[#allocation2 + $0xf] sm:$0xff]  ;;  %v2063_v43 = vpack.c.bf16 %v2048_v40, %v2047_v37  ;;  %v5511_v37 = vld [vmem:[%s6899_s3 + $0x460] sm:$0xff]   ;;  %v5515_v40 = vld [vmem:[%s6899_s3 + $0x458] sm:$0xff]  }
 0x374   : > { %v2065_v44 = vpack.c.bf16 %v2052_v41, %v2051_v62  ;;  %v2057_v45 = vld [vmem:[#allocation2 + $0xa] sm:$0xff]  ;;  %v2058_v46 = vld [vmem:[#allocation2 + $0x12] sm:$0xff]  ;;  %2624 = vmatprep.mubr.bf16.mxu0 %v2064_v42  ;;  %v5514_v62 = vld [vmem:[%s6899_s3 + $0x4a0] sm:$0xff]  }
 0x375   : > { %v2061_v47 = vld [vmem:[#allocation2 + $0xc] sm:$0xff]  ;;  %v2062_v48 = vld [vmem:[#allocation2 + $0x14] sm:$0xff]  ;;  %v2068_v50 = vpack.c.bf16 %v2058_v46, %v2057_v45  ;;  %2625 = vmatmul.mubr.bf16.vlgmr.msra.gmra.mxu0 %v2063_v43 }
 0x376   : > { %2666 = vmatmul.mubr.bf16.vlgmr.msra.gmra.mxu1 %v2065_v44  ;;  %v2070_v51 = vpack.c.bf16 %v2062_v48, %v2061_v47  ;;  %4803 = vmatpush3.bf16.msra.mxu0 %v5469_v38  ;;  %v2059_v16 = vld [vmem:[#allocation2 + $0xb] sm:$0xff]  ;;  %v2060_v20 = vld [vmem:[#allocation2 + $0x13] sm:$0xff]  ;;  %v5513_v38 = vld [vmem:[%s6899_s3 + $0x420] sm:$0xff]  }
 0x377   : > { %4825 = vmatpush3.bf16.msra.mxu1 %v5470_v35  ;;  %2706 = vmatprep.mubr.bf16.mxu0 %v2068_v50  ;;  %v2055_v21 = vld [vmem:[#allocation2 + $0x9] sm:$0xff]  ;;  %v2056_v22 = vld [vmem:[#allocation2 + $0x11] sm:$0xff]  ;;  %v2069_v23 = vpack.c.bf16 %v2060_v20, %v2059_v16 }
 0x378   : > { %2747 = vmatprep.mubr.bf16.mxu1 %v2070_v51  ;;  %4804 = vmatprep.subr.bf16.mxu0 %v5471_v49  ;;  %v2067_v24 = vpack.c.bf16 %v2056_v22, %v2055_v21  ;;  %v5509_v35 = vld [vmem:[%s6899_s3 + $0x428] sm:$0xff]   ;;  %v5518_v41 = vld [vmem:[%s6899_s3 + $0x498] sm:$0xff]   ;;  %v5520_v43 = vld [vmem:[%s6899_s3 + $0x4d0] sm:$0xff]  }
 0x379   : > { %4826 = vmatprep.subr.bf16.mxu1 %v5472_v52  ;;  %v5517_v42 = vld [vmem:[%s6899_s3 + $0x418] sm:$0xff]   ;;  %v5519_v44 = vld [vmem:[%s6899_s3 + $0x450] sm:$0xff]   ;;  %v5523_v47 = vld [vmem:[%s6899_s3 + $0x448] sm:$0xff]  }
 0x37a   : > { %4805 = vmatpush3.bf16.msra.mxu0 %v5473_v54  ;;  %v5522_v45 = vld [vmem:[%s6899_s3 + $0x490] sm:$0xff]   ;;  %v5524_v48 = vld [vmem:[%s6899_s3 + $0x4c8] sm:$0xff]   ;;  %v5528_v51 = vld [vmem:[%s6899_s3 + $0x4c0] sm:$0xff]  }
 0x37b   : > { %4827 = vmatpush3.bf16.msra.mxu1 %v5474_v53  ;;  %4806 = vmatprep.subr.bf16.mxu0 %v5475_v56  ;;  %v5521_v46 = vld [vmem:[%s6899_s3 + $0x410] sm:$0xff]   ;;  %v5525_v49 = vld [vmem:[%s6899_s3 + $0x408] sm:$0xff]   ;;  %v5527_v52 = vld [vmem:[%s6899_s3 + $0x440] sm:$0xff]  }
 0x37c   : > { %4828 = vmatprep.subr.bf16.mxu1 %v5476_v55  ;;  %v5526_v50 = vld [vmem:[%s6899_s3 + $0x488] sm:$0xff]   ;;  %v5530_v53 = vld [vmem:[%s6899_s3 + $0x480] sm:$0xff]   ;;  %v5532_v55 = vld [vmem:[%s6899_s3 + $0x5f8] sm:$0xff]  }
 0x37d   : > { %v5529_v54 = vld [vmem:[%s6899_s3 + $0x400] sm:$0xff]   ;;  %v5531_v56 = vld [vmem:[%s6899_s3 + $0x578] sm:$0xff]  }
 0x37e   : > { %4807 = vmatpush3.bf16.msra.mxu0 %v5477_v61 }
 0x37f   : > { %4829 = vmatpush3.bf16.msra.mxu1 %v5478_v57  ;;  %4808 = vmatprep.subr.bf16.mxu0 %v5479_v5 }
 0x380   : > { %4830 = vmatprep.subr.bf16.mxu1 %v5480_v3 }
 0x382   : > { %4809 = vmatpush3.bf16.msra.mxu0 %v5481_v6 }
 0x383   : > { %4831 = vmatpush3.bf16.msra.mxu1 %v5482_v7  ;;  %4810 = vmatprep.subr.bf16.mxu0 %v5483_v9  ;;  %v4226_v9 = vld [vmem:[%s6900_s4 + $0x1] ss:$0 sm:$0xff] }
 0x384   : > { %4832 = vmatprep.subr.bf16.mxu1 %v5484_v8 }
 0x386   : > { %4811 = vmatpush3.bf16.msra.mxu0 %v5485_v10 }
 0x387   : > { %4833 = vmatpush3.bf16.msra.mxu1 %v5486_v4  ;;  %4812 = vmatprep.subr.bf16.mxu0 %v5487_v1 }
 0x388   : > { %4834 = vmatprep.subr.bf16.mxu1 %v5488_v11 }
 0x38a   : > { %4813 = vmatpush3.bf16.msra.mxu0 %v5489_v13 }
 0x38b   : > { %4835 = vmatpush3.bf16.msra.mxu1 %v5490_v12  ;;  %4814 = vmatprep.subr.bf16.mxu0 %v5491_v14 }
 0x38c   : > { %4836 = vmatprep.subr.bf16.mxu1 %v5492_v63 }
 0x38e   : > { %4815 = vmatpush3.bf16.msra.mxu0 %v5493_v17 }
 0x38f   : > { %4837 = vmatpush3.bf16.msra.mxu1 %v5494_v15  ;;  %4816 = vmatprep.subr.bf16.mxu0 %v5495_v18 }
 0x390   : > { %4838 = vmatprep.subr.bf16.mxu1 %v5496_v2 }
 0x392   : > { %4817 = vmatpush3.bf16.msra.mxu0 %v5497_v0 }
 0x393   : > { %4839 = vmatpush3.bf16.msra.mxu1 %v5498_v19  ;;  %4846 = vmatprep.subr.bf16.mxu0 %v5499_v25 }
 0x394   : > { %4868 = vmatprep.subr.bf16.mxu1 %v5500_v26 }
 0x395   : > { %2707 = vmatmul.mubr.bf16.vlgmr.msra.gmra.mxu0 %v2067_v24 }
 0x396   : > { %2748 = vmatmul.mubr.bf16.vlgmr.msra.gmra.mxu1 %v2069_v23  ;;  %4847 = vmatpush3.bf16.msra.mxu0 %v5501_v27 }
 0x397   : > { %4869 = vmatpush3.bf16.msra.mxu1 %v5502_v28  ;;  %4848 = vmatprep.subr.bf16.mxu0 %v5503_v29 }
 0x398   : > { %4870 = vmatprep.subr.bf16.mxu1 %v5504_v30 }
 0x39a   : > { %4849 = vmatpush3.bf16.msra.mxu0 %v5505_v31 }
 0x39b   : > { %4871 = vmatpush3.bf16.msra.mxu1 %v5506_v32  ;;  %4850 = vmatprep.subr.bf16.mxu0 %v5507_v33  ;;  %v5534_v33 = vld [vmem:[%s6899_s3 + $0x5b8] sm:$0xff]  }
 0x39c   : > { %4872 = vmatprep.subr.bf16.mxu1 %v5508_v34 }
 0x39e   : > { %4851 = vmatpush3.bf16.msra.mxu0 %v5509_v35 }
 0x39f   : > { %4873 = vmatpush3.bf16.msra.mxu1 %v5510_v59  ;;  %4852 = vmatprep.subr.bf16.mxu0 %v5511_v37 }
 0x3a0   : > { %4874 = vmatprep.subr.bf16.mxu1 %v5512_v36  ;;  %v5533_v36 = vld [vmem:[%s6899_s3 + $0x538] sm:$0xff]  }
 0x3a2   : > { %4853 = vmatpush3.bf16.msra.mxu0 %v5513_v38 }
 0x3a3   : > { %4875 = vmatpush3.bf16.msra.mxu1 %v5514_v62  ;;  %4854 = vmatprep.subr.bf16.mxu0 %v5515_v40 }
 0x3a4   : > { %4876 = vmatprep.subr.bf16.mxu1 %v5516_v39 }
 0x3a6   : > { %4855 = vmatpush3.bf16.msra.mxu0 %v5517_v42 }
 0x3a7   : > { %4877 = vmatpush3.bf16.msra.mxu1 %v5518_v41  ;;  %4856 = vmatprep.subr.bf16.mxu0 %v5519_v44 }
 0x3a8   : > { %4878 = vmatprep.subr.bf16.mxu1 %v5520_v43 }
 0x3aa   : > { %4857 = vmatpush3.bf16.msra.mxu0 %v5521_v46  ;;  %v5535_v46 = vld [vmem:[%s6899_s3 + $0x570] sm:$0xff]  }
 0x3ab   : > { %4879 = vmatpush3.bf16.msra.mxu1 %v5522_v45  ;;  %4858 = vmatprep.subr.bf16.mxu0 %v5523_v47 }
 0x3ac   : > { %4880 = vmatprep.subr.bf16.mxu1 %v5524_v48 }
 0x3ae   : > { %4859 = vmatpush3.bf16.msra.mxu0 %v5525_v49  ;;  %v5536_v49 = vld [vmem:[%s6899_s3 + $0x5f0] sm:$0xff]  }
 0x3af   : > { %4881 = vmatpush3.bf16.msra.mxu1 %v5526_v50  ;;  %4860 = vmatprep.subr.bf16.mxu0 %v5527_v52  ;;  %v5538_v50 = vld [vmem:[%s6899_s3 + $0x5b0] sm:$0xff]   ;;  %v5540_v52 = vld [vmem:[%s6899_s3 + $0x5e8] sm:$0xff]  }
 0x3b0   : > { %4882 = vmatprep.subr.bf16.mxu1 %v5528_v51  ;;  %v5537_v51 = vld [vmem:[%s6899_s3 + $0x530] sm:$0xff]  }
 0x3b2   : > { %4861 = vmatpush3.bf16.msra.mxu0 %v5529_v54  ;;  %v5542_v54 = vld [vmem:[%s6899_s3 + $0x5a8] sm:$0xff]  }
 0x3b3   : > { %4883 = vmatpush3.bf16.msra.mxu1 %v5530_v53  ;;  %4890 = vmatprep.subr.bf16.mxu0 %v5531_v56  ;;  %v5539_v53 = vld [vmem:[%s6899_s3 + $0x568] sm:$0xff]   ;;  %v5544_v56 = vld [vmem:[%s6899_s3 + $0x5e0] sm:$0xff]  }
 0x3b4   : > { %4912 = vmatprep.subr.bf16.mxu1 %v5532_v55  ;;  %v5541_v55 = vld [vmem:[%s6899_s3 + $0x528] sm:$0xff]  }
 0x435   : > { %v4774_v57 = vpop.f32.mrf.mxu0 }
 0x436   : > { %v4796_v61 = vpop.f32.mrf.mxu1 }
 0x437   : > { %v4775_v3 = vpop.f32.mrf.mxu0 }
 0x438   : > { %v4797_v5 = vpop.f32.mrf.mxu1  ;;  %v4776_v8 = vadd.f32 %v4775_v3, %v4774_v57  ;;  %v5543_v57 = vld [vmem:[%s6899_s3 + $0x560] sm:$0xff]  }
 0x439   : > { %v4777_v7 = vpop.f32.mrf.mxu0  ;;  %v4798_v63 = vadd.f32 %v4797_v5, %v4796_v61  ;;  %v5546_v61 = vld [vmem:[%s6899_s3 + $0x5a0] sm:$0xff]   ;;  %v5548_v5 = vld [vmem:[%s6899_s3 + $0x5d8] sm:$0xff]  }
 0x43a   : > { %v4799_v6 = vpop.f32.mrf.mxu1  ;;  %v2627_v11 = vadd.f32 %v4776_v8, %v4226_v9  ;;  %v5545_v3 = vld [vmem:[%s6899_s3 + $0x520] sm:$0xff]   ;;  %v5549_v8 = vld [vmem:[%s6899_s3 + $0x518] sm:$0xff]  }
 0x43b   : > { %v4778_v4 = vpop.f32.mrf.mxu0 }
 0x43c   : > { %v4800_v10 = vpop.f32.mrf.mxu1  ;;  %v4779_v1 = vadd.f32 %v4778_v4, %v4777_v7  ;;  %v2668_v17 = vadd.f32 %v4798_v63, %v2627_v11  ;;  %v5547_v7 = vld [vmem:[%s6899_s3 + $0x558] sm:$0xff]   ;;  %v5551_v4 = vld [vmem:[%s6899_s3 + $0x550] sm:$0xff]   ;;  %v5557_v63 = vld [vmem:[%s6899_s3 + $0x508] sm:$0xff]  }
 0x43d   : > { %v4801_v16 = vadd.f32 %v4800_v10, %v4799_v6  ;;  %v5550_v6 = vld [vmem:[%s6899_s3 + $0x598] sm:$0xff]   ;;  %v5554_v10 = vld [vmem:[%s6899_s3 + $0x590] sm:$0xff]  }
 0x43e   : > { %v2630_v2 = vadd.f32 %v4779_v1, %v4226_v9  ;;  %v5552_v9 = vld [vmem:[%s6899_s3 + $0x5d0] sm:$0xff]   ;;  %v5556_v1 = vld [vmem:[%s6899_s3 + $0x5c8] sm:$0xff]  }
 0x43f   : > { %v5553_v11 = vld [vmem:[%s6899_s3 + $0x510] sm:$0xff]  }
 0x440   : > { %v2671_v24 = vadd.f32 %v4801_v16, %v2630_v2  ;;  %v5561_v2 = vld [vmem:[%s6899_s3 + $0x500] sm:$0xff]  }
 0x455   : > { %v4818_v13 = vpop.f32.mrf.mxu0 }
 0x456   : > { %v4840_v12 = vpop.f32.mrf.mxu1 }
 0x457   : > { %v4819_v15 = vpop.f32.mrf.mxu0 }
 0x458   : > { %v4841_v14 = vpop.f32.mrf.mxu1  ;;  %v4820_v18 = vadd.f32 %v4819_v15, %v4818_v13  ;;  %v5558_v13 = vld [vmem:[%s6899_s3 + $0x588] sm:$0xff]   ;;  %v5559_v15 = vld [vmem:[%s6899_s3 + $0x540] sm:$0xff]  }
 0x459   : > { %v4821_v0 = vpop.f32.mrf.mxu0  ;;  %v4842_v21 = vadd.f32 %v4841_v14, %v4840_v12  ;;  %v5555_v12 = vld [vmem:[%s6899_s3 + $0x548] sm:$0xff]   ;;  %v5560_v14 = vld [vmem:[%s6899_s3 + $0x5c0] sm:$0xff]  }
 0x45a   : > { %v4843_v19 = vpop.f32.mrf.mxu1  ;;  %v2709_v20 = vadd.f32 %v4820_v18, %v2668_v17  ;;  %v5562_v17 = vld [vmem:[%s6899_s3 + $0x580] sm:$0xff]  }
 0x45b   : > { %v4822_v22 = vpop.f32.mrf.mxu0 }
 0x45c   : > { %v4844_v23 = vpop.f32.mrf.mxu1  ;;  %v2750_v25 = vadd.f32 %v4842_v21, %v2709_v20  ;;  %v4823_v26 = vadd.f32 %v4822_v22, %v4821_v0  ;;  %v6779_v21 = vld [vmem:[#allocation2] sm:$0xff] }
 0x45d   : > { %v4845_v29 = vadd.f32 %v4844_v23, %v4843_v19 }
 0x45e   : > { %v2756_v27 = vmax.f32 %v2750_v25, 0.0  ;;  %v2712_v28 = vadd.f32 %v4823_v26, %v2671_v24 }
 0x460   : > { %2758 = vst [vmem:[#allocation2 + $0x8] sm:$0xff] %v2756_v27  ;;  %v2753_v30 = vadd.f32 %v4845_v29, %v2712_v28 }
 0x462   : > { %v2757_v31 = vmax.f32 %v2753_v30, 0.0 }
 0x464   : > { %2759 = vst [vmem:[#allocation2 + $0x10] sm:$0xff] %v2757_v31  ;;  %v2779_v32 = vpack.c.bf16 %v2757_v31, %v2756_v27 }
 0x466   : > { %3378 = vmatprep.mubr.bf16.mxu1 %v2779_v32  ;;  %v4420_v32 = vld [vmem:[%s6900_s4 + $0x2] ss:$0 sm:$0xff] }
 0x467   : > { %v2762_v34 = vld [vmem:[#allocation2 + $0x6] sm:$0xff] }
 0x468   : > { %v2760_v59 = vld [vmem:[#allocation2 + $0x5] sm:$0xff] }
 0x469   : > { %v2764_v35 = vld [vmem:[#allocation2 + $0x7] sm:$0xff] }
 0x46b   : > { %v2763_v37 = vld [vmem:[#allocation2 + $0xe] sm:$0xff] }
 0x46c   : > { %v2761_v62 = vld [vmem:[#allocation2 + $0xd] sm:$0xff]  ;;  %v2777_v39 = vpack.c.bf16 %v2763_v37, %v2762_v34 }
 0x46d   : > { %v2765_v38 = vld [vmem:[#allocation2 + $0xf] sm:$0xff]  ;;  %v2776_v40 = vpack.c.bf16 %v2761_v62, %v2760_v59 }
 0x46e   : > { %v2778_v41 = vpack.c.bf16 %v2765_v38, %v2764_v35  ;;  %v2770_v42 = vld [vmem:[#allocation2 + $0xa] sm:$0xff]  ;;  %v2771_v43 = vld [vmem:[#allocation2 + $0x12] sm:$0xff]  ;;  %3337 = vmatprep.mubr.bf16.mxu0 %v2777_v39 }
 0x46f   : > { %v2774_v44 = vld [vmem:[#allocation2 + $0xc] sm:$0xff]  ;;  %v2775_v45 = vld [vmem:[#allocation2 + $0x14] sm:$0xff]  ;;  %v2781_v47 = vpack.c.bf16 %v2771_v43, %v2770_v42  ;;  %3338 = vmatmul.mubr.bf16.vlgmr.msra.gmra.mxu0 %v2776_v40 }
 0x470   : > { %3379 = vmatmul.mubr.bf16.vlgmr.msra.gmra.mxu1 %v2778_v41  ;;  %v2783_v48 = vpack.c.bf16 %v2775_v45, %v2774_v44  ;;  %4891 = vmatpush3.bf16.msra.mxu0 %v5533_v36  ;;  %v2772_v18 = vld [vmem:[#allocation2 + $0xb] sm:$0xff]  ;;  %v2773_v19 = vld [vmem:[#allocation2 + $0x13] sm:$0xff]  ;;  %v3471_v44 = vmul.u32 4, %v5794_v58 }
 0x471   : > { %4913 = vmatpush3.bf16.msra.mxu1 %v5534_v33  ;;  %3419 = vmatprep.mubr.bf16.mxu0 %v2781_v47  ;;  %v2768_v0 = vld [vmem:[#allocation2 + $0x9] sm:$0xff]  ;;  %v2769_v16 = vld [vmem:[#allocation2 + $0x11] sm:$0xff]  ;;  %v2782_v20 = vpack.c.bf16 %v2773_v19, %v2772_v18 }
 0x472   : > { %3460 = vmatprep.mubr.bf16.mxu1 %v2783_v48  ;;  %4892 = vmatprep.subr.bf16.mxu0 %v5535_v46  ;;  %v2780_v22 = vpack.c.bf16 %v2769_v16, %v2768_v0  ;;  %vm3472_vm4 = vcmp.eq.s32.totalorder %v5799_v60, %v3471_v44 }
 0x473   : > { %4914 = vmatprep.subr.bf16.mxu1 %v5536_v49  ;;  %v4485_v58 = vsel %vm3472_vm4, 1.0, %v6779_v21 }
 0x474   : > { %4893 = vmatpush3.bf16.msra.mxu0 %v5537_v51 }
 0x475   : > { %4915 = vmatpush3.bf16.msra.mxu1 %v5538_v50  ;;  %4894 = vmatprep.subr.bf16.mxu0 %v5539_v53  ;;  %v3549_v53 = vadd.s32 1, %v3471_v44 }
 0x476   : > { %4916 = vmatprep.subr.bf16.mxu1 %v5540_v52 }
 0x477   : > { %vm3550_vm5 = vcmp.eq.s32.totalorder %v5799_v60, %v3549_v53 }
 0x478   : > { %4895 = vmatpush3.bf16.msra.mxu0 %v5541_v55 }
 0x479   : > { %4917 = vmatpush3.bf16.msra.mxu1 %v5542_v54  ;;  %4896 = vmatprep.subr.bf16.mxu0 %v5543_v57  ;;  %v3627_v57 = vadd.s32 2, %v3471_v44 }
 0x47a   : > { %4918 = vmatprep.subr.bf16.mxu1 %v5544_v56 }
 0x47b   : > { %vm3628_vm7 = vcmp.eq.s32.totalorder %v5799_v60, %v3627_v57 }
 0x47c   : > { %4897 = vmatpush3.bf16.msra.mxu0 %v5545_v3  ;;  %v3705_v3 = vadd.s32 3, %v3471_v44 }
 0x47d   : > { %4919 = vmatpush3.bf16.msra.mxu1 %v5546_v61  ;;  %4898 = vmatprep.subr.bf16.mxu0 %v5547_v7  ;;  %v4489_v7 = vsel %vm3628_vm7, 1.0, %v6779_v21 }
 0x47e   : > { %4920 = vmatprep.subr.bf16.mxu1 %v5548_v5  ;;  %v4487_v5 = vsel %vm3550_vm5, 1.0, %v6779_v21  ;;  %vm3706_vm8 = vcmp.eq.s32.totalorder %v5799_v60, %v3705_v3  ;;  %v5564_v60 = vld [vmem:[%s6901_s5 + $0x30] sm:$0xff]  }
 0x480   : > { %4899 = vmatpush3.bf16.msra.mxu0 %v5549_v8  ;;  %v4491_v8 = vsel %vm3706_vm8, 1.0, %v6779_v21 }
 0x481   : > { %4921 = vmatpush3.bf16.msra.mxu1 %v5550_v6  ;;  %4900 = vmatprep.subr.bf16.mxu0 %v5551_v4  ;;  %v5563_v6 = vld [vmem:[%s6901_s5 + $0x38] sm:$0xff]   ;;  %v5566_v4 = vld [vmem:[%s6901_s5 + $0x20] sm:$0xff]  }
 0x482   : > { %4922 = vmatprep.subr.bf16.mxu1 %v5552_v9  ;;  %v5565_v9 = vld [vmem:[%s6901_s5 + $0x28] sm:$0xff]  }
 0x484   : > { %4901 = vmatpush3.bf16.msra.mxu0 %v5553_v11  ;;  %v5568_v11 = vld [vmem:[%s6901_s5 + $0x10] sm:$0xff]  }
 0x485   : > { %4923 = vmatpush3.bf16.msra.mxu1 %v5554_v10  ;;  %4902 = vmatprep.subr.bf16.mxu0 %v5555_v12  ;;  %v5567_v10 = vld [vmem:[%s6901_s5 + $0x18] sm:$0xff]   ;;  %v5570_v12 = vld [vmem:[%s6901_s5] sm:$0xff]  }
 0x486   : > { %4924 = vmatprep.subr.bf16.mxu1 %v5556_v1  ;;  %v5569_v1 = vld [vmem:[%s6901_s5 + $0x8] sm:$0xff]  }
 0x488   : > { %4903 = vmatpush3.bf16.msra.mxu0 %v5557_v63 }
 0x489   : > { %4925 = vmatpush3.bf16.msra.mxu1 %v5558_v13  ;;  %4904 = vmatprep.subr.bf16.mxu0 %v5559_v15 }
 0x48a   : > { %4926 = vmatprep.subr.bf16.mxu1 %v5560_v14 }
 0x48c   : > { %4905 = vmatpush3.bf16.msra.mxu0 %v5561_v2 }
 0x48d   : > { %4927 = vmatpush3.bf16.msra.mxu1 %v5562_v17  ;;  %5275 = vmatprep.subr.mxu0 %v6779_v21 }
 0x48e   : > { %5282 = vmatprep.subr.mxu1 %v6779_v21 }
 0x48f   : > { %3420 = vmatmul.mubr.bf16.vlgmr.msra.gmra.mxu0 %v2780_v22 }
 0x490   : > { %3461 = vmatmul.mubr.bf16.vlgmr.msra.gmra.mxu1 %v2782_v20  ;;  %5279 = vmatprep.mubr.msk.f32.mxu0 %vm5637_vm3, %v6779_v21 }
 0x491   : > { %5286 = vmatprep.mubr.msk.f32.mxu1 %vm5637_vm3, %v6779_v21 }
 0x52f   : > { %v4862_v23 = vpop.f32.mrf.mxu0 }
 0x530   : > { %v4884_v24 = vpop.f32.mrf.mxu1 }
 0x531   : > { %v4863_v25 = vpop.f32.mrf.mxu0 }
 0x532   : > { %v4885_v26 = vpop.f32.mrf.mxu1  ;;  %v4864_v30 = vadd.f32 %v4863_v25, %v4862_v23 }
 0x533   : > { %v4865_v27 = vpop.f32.mrf.mxu0  ;;  %v4886_v62 = vadd.f32 %v4885_v26, %v4884_v24 }
 0x534   : > { %v4887_v28 = vpop.f32.mrf.mxu1  ;;  %v3340_v35 = vadd.f32 %v4864_v30, %v4420_v32 }
 0x535   : > { %v4866_v29 = vpop.f32.mrf.mxu0 }
 0x536   : > { %v4888_v31 = vpop.f32.mrf.mxu1  ;;  %v4867_v33 = vadd.f32 %v4866_v29, %v4865_v27  ;;  %v3381_v42 = vadd.f32 %v4886_v62, %v3340_v35 }
 0x537   : > { %v4889_v43 = vadd.f32 %v4888_v31, %v4887_v28 }
 0x538   : > { %v3343_v38 = vadd.f32 %v4867_v33, %v4420_v32 }
 0x53a   : > { %v3384_v47 = vadd.f32 %v4889_v43, %v3343_v38 }
 0x54f   : > { %v4906_v59 = vpop.f32.mrf.mxu0 }
 0x550   : > { %v4928_v34 = vpop.f32.mrf.mxu1 }
 0x551   : > { %v4907_v37 = vpop.f32.mrf.mxu0 }
 0x552   : > { %v4929_v36 = vpop.f32.mrf.mxu1  ;;  %v4908_v39 = vadd.f32 %v4907_v37, %v4906_v59 }
 0x553   : > { %v4909_v41 = vpop.f32.mrf.mxu0  ;;  %v4930_v50 = vadd.f32 %v4929_v36, %v4928_v34 }
 0x554   : > { %v4931_v40 = vpop.f32.mrf.mxu1  ;;  %v3422_v48 = vadd.f32 %v4908_v39, %v3381_v42 }
 0x555   : > { %v4910_v45 = vpop.f32.mrf.mxu0 }
 0x556   : > { %v4932_v46 = vpop.f32.mrf.mxu1  ;;  %v4911_v49 = vadd.f32 %v4910_v45, %v4909_v41  ;;  %v3463_v54 = vadd.f32 %v4930_v50, %v3422_v48 }
 0x557   : > { %v4933_v52 = vadd.f32 %v4932_v46, %v4931_v40 }
 0x558   : > { %v3425_v51 = vadd.f32 %v4911_v49, %v3384_v47  ;;  %v3469_v61 = vmax.f32 %v3463_v54, 0.0 }
 0x55a   : > { %v3466_v55 = vadd.f32 %v4933_v52, %v3425_v51 }
 0x55c   : > { %v3470_v56 = vmax.f32 %v3466_v55, 0.0 }
 0x55e   : > { %5276 = vmatpush3.msra.mxu0 %v3470_v56  ;;  %5283 = vmatpush3.msra.mxu1 %v3470_v56 }
 0x55f   : > { %5277 = vmatprep.subr.mxu0 %v6779_v21  ;;  %5284 = vmatprep.subr.mxu1 %v6779_v21 }
 0x560   : > { %5278 = vmatpush3.msra.mxu0 %v3469_v61  ;;  %5285 = vmatpush3.msra.mxu1 %v3469_v61 }
 0x561   : > { %5280 = vmatmul.mubr.msk.f32.vlgmr.msra.gmra.mxu0 %vm3475_vm6, %v4485_v58  ;;  %5289 = vmatprep.subr.mxu0 %v6779_v21 }
 0x562   : > { %5296 = vmatprep.subr.mxu1 %v6779_v21  ;;  %5287 = vmatmul.mubr.msk.f32.vlgmr.msra.gmra.mxu1 %vm3475_vm6, %v4487_v5 }
 0x563   : > { %5290 = vmatpush3.msra.mxu0 %v3470_v56  ;;  %5297 = vmatpush3.msra.mxu1 %v3470_v56 }
 0x564   : > { %5291 = vmatprep.subr.mxu0 %v6779_v21  ;;  %5298 = vmatprep.subr.mxu1 %v6779_v21 }
 0x565   : > { %5292 = vmatpush3.msra.mxu0 %v3469_v61  ;;  %5293 = vmatprep.mubr.msk.f32.mxu0 %vm5637_vm3, %v6779_v21 }
 0x566   : > { %5299 = vmatpush3.msra.mxu1 %v3469_v61  ;;  %5294 = vmatmul.mubr.msk.f32.vlgmr.msra.gmra.mxu0 %vm3475_vm6, %v4489_v7 }
 0x567   : > { %5300 = vmatprep.mubr.msk.f32.mxu1 %vm5637_vm3, %v6779_v21  ;;  %5303 = vmatprep.subr.bf16.mxu0 %v6779_v21 }
 0x568   : > { %5301 = vmatmul.mubr.msk.f32.vlgmr.msra.gmra.mxu1 %vm3475_vm6, %v4491_v8  ;;  %5304 = vmatpush3.bf16.msra.mxu0 %v5563_v6 }
 0x569   : > { %5305 = vmatprep.subr.bf16.mxu0 %v6779_v21  ;;  %5319 = vmatprep.mubr.msk.bf16.mxu0 %vm5637_vm3, %v6779_v21 }
 0x56c   : > { %5306 = vmatpush3.bf16.msra.mxu0 %v5564_v60 }
 0x56d   : > { %5307 = vmatprep.subr.bf16.mxu0 %v6779_v21 }
 0x570   : > { %5308 = vmatpush3.bf16.msra.mxu0 %v5565_v9 }
 0x571   : > { %5309 = vmatprep.subr.bf16.mxu0 %v6779_v21 }
 0x574   : > { %5310 = vmatpush3.bf16.msra.mxu0 %v5566_v4 }
 0x575   : > { %5311 = vmatprep.subr.bf16.mxu0 %v6779_v21 }
 0x578   : > { %5312 = vmatpush3.bf16.msra.mxu0 %v5567_v10 }
 0x579   : > { %5313 = vmatprep.subr.bf16.mxu0 %v6779_v21 }
 0x57c   : > { %5314 = vmatpush3.bf16.msra.mxu0 %v5568_v11 }
 0x57d   : > { %5315 = vmatprep.subr.bf16.mxu0 %v6779_v21 }
 0x580   : > { %5316 = vmatpush3.bf16.msra.mxu0 %v5569_v1 }
 0x581   : > { %5317 = vmatprep.subr.bf16.mxu0 %v6779_v21  ;;  %v4493_v21 = vld [vmem:[%s6902_s6] ss:$0 sm:$0xff] }
 0x584   : > { %5318 = vmatpush3.bf16.msra.mxu0 %v5570_v12 }
 0x621   : > { %v3545_v13 = vpop.f32.mrf.mxu0 }
 0x622   : > { %v3622_v63 = vpop.f32.mrf.mxu1 }
 0x623   : > { %v5281_v14 = vpop.f32.mrf.mxu0  ;;  %v3626_v17 = vmax.f32 %v3545_v13, %v3622_v63 }
 0x624   : > { %v5288_v15 = vpop.f32.mrf.mxu1 }
 0x626   : > { %v3700_v2 = vpop.f32.mrf.mxu0 }
 0x627   : > { %v3704_v18 = vmax.f32 %v3626_v17, %v3700_v2 }
 0x628   : > { %v3778_v19 = vpop.f32.mrf.mxu1  ;;  %v5295_v0 = vpop.f32.mrf.mxu0 }
 0x629   : > { %v3782_v16 = vmax.f32 %v3704_v18, %v3778_v19 }
 0x62a   : > { %v5302_v20 = vpop.f32.mrf.mxu1 }
 0x62b   : > { %v3783_v22 = vpack.c.bf16 %v3782_v16, %v3782_v16 }
 0x62d   : > { %5320 = vmatmul.mubr.bf16.vlgmr.msra.gmra.mxu0 %v3783_v22 }
 0x6ed   : > { %v3889_v23 = vpop.f32.mrf.mxu0 }
 0x6ee   : > { %v3890_v24 = vadd.f32 %v4493_v21, %v3889_v23 }
 0x6ef   : > { %v5321_v25 = vpop.f32.mrf.mxu0 }
 0x6f0   : > { %3895 = vst [vmem:[%s271_s19] sm:$0xf] %v3890_v24 }
 0x6f1   : > { %v3892_v26 = vpop.f32.mrf.mxu0 }
 0x6f2   : > { %5585 = shalt.err (!%p5582_p3)
}
 0x6f3   : > { %s5586_s15 = scalar_lea.hbm %s6855_s23, 64  ;;  %s5590_s17 = scalar_lea.hbm %s6903_s7, 128 }
 0x6f4   : > { %p5587_p4 = scmp.ne.s32.totalorder %s6855_s23, %s5586_s15  ;;  %p5591_p9 = scmp.lt.s32.totalorder %s6855_s23, %s6903_s7 }
 0x6f5   : > { %p5592_p10 = scmp.lt.s32.totalorder %s5590_s17, %s5586_s15 }
 0x6f6   : > { %p5588_p7 = pnand %p5587_p4, %p5717_p5 }
 0x6f7   : > { %p5593_p11 = por %p5592_p10, %p5591_p9 }
 0x6f8   : > { %p5589_p8 = pneg %p5588_p7 }
 0x6fa   : > { %p5594_p12 = pnand %p5593_p11, %p5589_p8 }
 0x6fc   : > { %5597 = shalt.err (!%p5594_p12)
}
 0x6fd   : > { %5324 = dma.vmem_to_hbm [thread:$0]  (%p5717_p5), %s6857_s20, 64, %s6855_s23, %s3897_s29   ;;  %v5322_v27 = vpop.f32.mrf.mxu0 }
 0x6fe PF: > { %p5330_p13 = scmp.ge.s32.totalorder %s5632_s27, 2  ;;  %s3922_s21 = sand.u32 1, %s5620_s24  }
 0x6ff   : > { %s3923_s22 = scalar_lea.sflag [#allocation4], %s3922_s21 }
 0x700   : > { %p5327_p0 = pnand %p5330_p13, %p5721_p6 }
 0x702   : > { %p5328_p1 = pneg %p5327_p0 }
 0x704   : > { %5615 = dma.done.wait (%p5328_p1), %s3923_s22, 64  }
 0x705   : > { %5617 = vsyncadd (%p5328_p1), %s3923_s22, 4294967232  ;;  %p17_p2 = scmp.ge.s32.totalorder %s5704_s30, 4   ;;  %s6906_s24 = smov %s5624_s25 }
 0x706   : > { %s6907_s25 = smov %s5628_s26  ;;  %s6908_s26 = smov %s5715_s10 }
 0x707   : > { %s6909_s27 = smov %s5704_s30  ;;  %19 = sbr.rel (!%p17_p2) target bundleno = 3 (0x3), region = 88 }
 0x70c   :  { %3928 = vsyncpa [#allocation4], 1 }
 0x70d   :  { %3930 = vsyncpa [#allocation4 + $0x1], 1 }

</bundles_post_ra>
